<compile_context>
chip_gen: v6e
topology: v6e:2x2x1
jax: 0.10.0
libtpu: 0.0.40
codegen_flags: <defaults>
</compile_context>

<pallas_src>
import functools

import jax
import jax.numpy as jnp
from jax.experimental import pallas as pl
from jax.experimental.pallas import tpu as pltpu


def _round_up(n, m):
    return ((n + m - 1) // m) * m


def _lstm_fc_kernel(x_ref, wih_ref, whh_ref, b_ref, fcw_ref, fcb_ref,
                    out_ref, xp_scr, hs_scr, *, seq_len, b_pad, h_pad):
    # ---- Prologue (off the serial path): batched input projection for all
    # timesteps in a single MXU matmul, bias folded in once. -----------------
    xp_scr[...] = (
        jnp.dot(x_ref[...], wih_ref[...], preferred_element_type=jnp.float32)
        + b_ref[...])

    # ---- Serial LSTM recurrence, fully unrolled in-kernel. h/c live in vregs
    # as fori_loop carries; each step is one (B_pad, H_pad) @ (H_pad, 4*H_pad)
    # matmul plus lane-aligned elementwise gate math (PyTorch order i,f,g,o).
    def step(t, carry):
        h, c = carry
        row0 = pl.multiple_of(t * b_pad, b_pad)
        gates = xp_scr[pl.ds(row0, b_pad), :] + jnp.dot(
            h, whh_ref[...], preferred_element_type=jnp.float32)
        # Each gate block spans exactly h_pad (=k*128) lanes -> aligned slices.
        i_g = jax.nn.sigmoid(gates[:, 0 * h_pad:1 * h_pad])
        f_g = jax.nn.sigmoid(gates[:, 1 * h_pad:2 * h_pad])
        g_g = jnp.tanh(gates[:, 2 * h_pad:3 * h_pad])
        o_g = jax.nn.sigmoid(gates[:, 3 * h_pad:4 * h_pad])
        c_new = f_g * c + i_g * g_g
        h_new = o_g * jnp.tanh(c_new)
        hs_scr[pl.ds(row0, b_pad), :] = h_new
        return (h_new, c_new)

    # self.init (trainable or not) is constant-zero at forward time.
    init = (jnp.zeros((b_pad, h_pad), jnp.float32),
            jnp.zeros((b_pad, h_pad), jnp.float32))
    jax.lax.fori_loop(0, seq_len, step, init, unroll=True)

    # ---- Epilogue: dropout(eval) == identity; one fused fc matmul and one
    # lane-dense unmasked store for all timesteps. ----------------------------
    out_ref[...] = (
        jnp.dot(hs_scr[...], fcw_ref[...], preferred_element_type=jnp.float32)
        + fcb_ref[...])


def audio_to_keypoint_rnn_pallas(x, params):
    """x: (T, B, D) float32. Returns predictions of shape (T*B, output_dim)."""
    T, B, D = x.shape
    w_ih = params["w_ih"]      # (4H, D)
    w_hh = params["w_hh"]      # (4H, H)
    b_ih = params["b_ih"]      # (4H,)
    b_hh = params["b_hh"]      # (4H,)
    fc_w = params["fc_w"]      # (O, H)
    fc_b = params["fc_b"]      # (O,)

    H = w_hh.shape[1]
    O = fc_w.shape[0]

    B_pad = _round_up(B, 8)      # full sublane tile
    H_pad = _round_up(H, 128)    # full lane tile per gate
    O_pad = _round_up(O, 128)    # lane-dense output slab

    # ---- Parameter glue: transpose, zero-pad each gate block to H_pad lanes
    # (vreg-aligned gate slices), zero-pad hidden rows, combine biases once.
    # Zero padding keeps padded h/c columns identically zero through the
    # recurrence (g=tanh(0)=0 -> c_pad stays 0 -> h_pad stays 0).
    def pad_gate_cols(w_t):  # (rows, 4H) -> (rows, 4*H_pad)
        r = w_t.shape[0]
        w4 = w_t.reshape(r, 4, H)
        w4 = jnp.pad(w4, ((0, 0), (0, 0), (0, H_pad - H)))
        return w4.reshape(r, 4 * H_pad)

    w_ih_t = pad_gate_cols(jnp.asarray(w_ih.T, jnp.float32))              # (D, 4Hp)
    w_hh_t = pad_gate_cols(jnp.asarray(w_hh.T, jnp.float32))              # (H, 4Hp)
    w_hh_t = jnp.pad(w_hh_t, ((0, H_pad - H), (0, 0)))                    # (Hp, 4Hp)
    b = jnp.asarray(b_ih, jnp.float32) + jnp.asarray(b_hh, jnp.float32)   # (4H,)
    b = jnp.pad(b.reshape(4, H), ((0, 0), (0, H_pad - H))).reshape(1, 4 * H_pad)
    fc_w_t = jnp.pad(jnp.asarray(fc_w.T, jnp.float32),
                     ((0, H_pad - H), (0, O_pad - O)))                    # (Hp, Op)
    fc_b_row = jnp.pad(jnp.asarray(fc_b, jnp.float32), (0, O_pad - O))[None, :]

    # Batch padded to a full sublane tile, time-flattened so the kernel sees a
    # single (T*B_pad, D) slab (step t occupies rows [t*B_pad, (t+1)*B_pad)).
    x_p = jnp.pad(jnp.asarray(x, jnp.float32), ((0, 0), (0, B_pad - B), (0, 0)))
    x_flat = x_p.reshape(T * B_pad, D)

    kernel = functools.partial(_lstm_fc_kernel,
                               seq_len=T, b_pad=B_pad, h_pad=H_pad)

    out = pl.pallas_call(
        kernel,
        out_shape=jax.ShapeDtypeStruct((T * B_pad, O_pad), jnp.float32),
        grid_spec=pltpu.PrefetchScalarGridSpec(
            num_scalar_prefetch=0,
            grid=(1,),   # single invocation; whole recurrence runs in-kernel
            in_specs=[
                pl.BlockSpec((T * B_pad, D), lambda i: (0, 0)),       # x (flat)
                pl.BlockSpec((D, 4 * H_pad), lambda i: (0, 0)),       # W_ih^T (padded)
                pl.BlockSpec((H_pad, 4 * H_pad), lambda i: (0, 0)),   # W_hh^T (padded)
                pl.BlockSpec((1, 4 * H_pad), lambda i: (0, 0)),       # b_ih + b_hh
                pl.BlockSpec((H_pad, O_pad), lambda i: (0, 0)),       # fc W^T (padded)
                pl.BlockSpec((1, O_pad), lambda i: (0, 0)),           # fc b (padded)
            ],
            out_specs=pl.BlockSpec((T * B_pad, O_pad), lambda i: (0, 0)),
            scratch_shapes=[
                pltpu.VMEM((T * B_pad, 4 * H_pad), jnp.float32),  # x-projection
                pltpu.VMEM((T * B_pad, H_pad), jnp.float32),      # stacked h_t
            ],
        ),
        compiler_params=pltpu.CompilerParams(
            dimension_semantics=("arbitrary",)),
    )(x_flat, w_ih_t, w_hh_t, b, fc_w_t, fc_b_row)

    # Strip batch/lane padding; matches `output.view(-1, H)` -> fc row order.
    out = out.reshape(T, B_pad, O_pad)[:, :B, :O]
    return out.reshape(T * B, O)


def _xavier_normal(key, shape):
    fan_out, fan_in = shape
    std = (2.0 / (fan_in + fan_out)) ** 0.5
    return std * jax.random.normal(key, shape, dtype=jnp.float32)


def init_params(key, input_dim, hidden_dim, output_dim):
    k = jax.random.split(key, 6)
    return {
        # nn.LSTM param shapes, initialized as in AudioToKeypointRNN.initialize()
        "w_ih": _xavier_normal(k[0], (4 * hidden_dim, input_dim)),
        "w_hh": _xavier_normal(k[1], (4 * hidden_dim, hidden_dim)),
        "b_ih": jax.random.uniform(k[2], (4 * hidden_dim,), jnp.float32, 0.25, 0.5),
        "b_hh": jax.random.uniform(k[3], (4 * hidden_dim,), jnp.float32, 0.25, 0.5),
        "fc_w": _xavier_normal(k[4], (output_dim, hidden_dim)),
        "fc_b": jnp.zeros((output_dim,), jnp.float32),
    }


def reference_forward(x, params):
    """Pure-JAX reference of the PyTorch forward (eval mode)."""
    T, B, D = x.shape
    H = params["w_hh"].shape[1]
    w_ih_t = params["w_ih"].T
    w_hh_t = params["w_hh"].T
    b = params["b_ih"] + params["b_hh"]

    def step(carry, x_t):
        h, c = carry
        gates = x_t @ w_ih_t + h @ w_hh_t + b
        i_g = jax.nn.sigmoid(gates[:, 0 * H:1 * H])
        f_g = jax.nn.sigmoid(gates[:, 1 * H:2 * H])
        g_g = jnp.tanh(gates[:, 2 * H:3 * H])
        o_g = jax.nn.sigmoid(gates[:, 3 * H:4 * H])
        c_new = f_g * c + i_g * g_g
        h_new = o_g * jnp.tanh(c_new)
        return (h_new, c_new), h_new

    init = (jnp.zeros((B, H), jnp.float32), jnp.zeros((B, H), jnp.float32))
    _, hs = jax.lax.scan(step, init, x)             # (T, B, H)
    out = hs.reshape(-1, H)
    return out @ params["fc_w"].T + params["fc_b"]


if __name__ == "__main__":
    # Small shapes implied by the module: seq=8, batch=4, input_dim=16,
    # hidden_dim=32, output_dim=16.
    T, B, D, H, O = 8, 4, 16, 32, 16

    key = jax.random.PRNGKey(0)
    k_x, k_p = jax.random.split(key)
    x = jax.random.normal(k_x, (T, B, D), dtype=jnp.float32)
    params = init_params(k_p, D, H, O)

    preds = audio_to_keypoint_rnn_pallas(x, params)
    preds = jax.block_until_ready(preds)

    ref = reference_forward(x, params)
    assert preds.shape == (T * B, O)
    assert jnp.allclose(preds, ref, atol=1e-4, rtol=1e-4), (
        float(jnp.max(jnp.abs(preds - ref))))

    print("KERNEL_OK")
</pallas_src>

<mosaic_0001>
module attributes {stable_mosaic.version = 11 : i64} {
  func.func @_lstm_fc_kernel(%arg0: i32, %arg1: memref<64x16xf32, #tpu.memory_space<vmem>>, %arg2: memref<16x512xf32, #tpu.memory_space<vmem>>, %arg3: memref<128x512xf32, #tpu.memory_space<vmem>>, %arg4: memref<1x512xf32, #tpu.memory_space<vmem>>, %arg5: memref<128x128xf32, #tpu.memory_space<vmem>>, %arg6: memref<1x128xf32, #tpu.memory_space<vmem>>, %arg7: memref<64x128xf32, #tpu.memory_space<vmem>>, %arg8: memref<64x512xf32, #tpu.memory_space<vmem>>, %arg9: memref<64x128xf32, #tpu.memory_space<vmem>>) attributes {dimension_semantics = [#tpu.dimension_semantics<arbitrary>], iteration_bounds = array<i64: 1>, scalar_prefetch = 0 : i64, scratch_operands = 2 : i64, tpu.core_type = #tpu.core_type<tc>, window_params = [{pipeline_mode = #tpu.pipeline_mode<synchronous>, transform_indices = @transform_0, window_bounds = array<i64: 64, 16>}, {pipeline_mode = #tpu.pipeline_mode<synchronous>, transform_indices = @transform_1, window_bounds = array<i64: 16, 512>}, {pipeline_mode = #tpu.pipeline_mode<synchronous>, transform_indices = @transform_2, window_bounds = array<i64: 128, 512>}, {pipeline_mode = #tpu.pipeline_mode<synchronous>, transform_indices = @transform_3, window_bounds = array<i64: 1, 512>}, {pipeline_mode = #tpu.pipeline_mode<synchronous>, transform_indices = @transform_4, window_bounds = array<i64: 128, 128>}, {pipeline_mode = #tpu.pipeline_mode<synchronous>, transform_indices = @transform_5, window_bounds = array<i64: 1, 128>}, {pipeline_mode = #tpu.pipeline_mode<synchronous>, transform_indices = @transform_6, window_bounds = array<i64: 64, 128>}]} {
    %c0 = arith.constant 0 : index
    %c0_0 = arith.constant 0 : index
    %0 = vector.load %arg1[%c0, %c0_0] : memref<64x16xf32, #tpu.memory_space<vmem>>, vector<64x16xf32>
    %c0_1 = arith.constant 0 : index
    %c0_2 = arith.constant 0 : index
    %1 = vector.load %arg2[%c0_1, %c0_2] : memref<16x512xf32, #tpu.memory_space<vmem>>, vector<16x512xf32>
    %cst = arith.constant dense<0.000000e+00> : vector<64x512xf32>
    %2 = tpu.matmul %0, %1, %cst {dimension_numbers = #tpu.dot_dimension_numbers<[1], [0], [0], [1], [0, 0, 1, 1], [], []>} : vector<64x16xf32>, vector<16x512xf32>, vector<64x512xf32> -> vector<64x512xf32>
    %c0_3 = arith.constant 0 : index
    %c0_4 = arith.constant 0 : index
    %3 = vector.load %arg4[%c0_3, %c0_4] : memref<1x512xf32, #tpu.memory_space<vmem>>, vector<1x512xf32>
    %4 = vector.broadcast %3 : vector<1x512xf32> to vector<64x512xf32>
    %5 = arith.addf %2, %4 : vector<64x512xf32>
    %c0_5 = arith.constant 0 : index
    %c0_6 = arith.constant 0 : index
    %6 = vector.load %arg8[%c0_5, %c0_6] : memref<64x512xf32, #tpu.memory_space<vmem>>, vector<64x512xf32>
    tpu.vector_store %arg8[%c0_5, %c0_6], %5 {strides = array<i32>} : memref<64x512xf32, #tpu.memory_space<vmem>>, vector<64x512xf32>,
    %cst_7 = arith.constant 0.000000e+00 : f32
    %7 = vector.broadcast %cst_7 : f32 to vector<8x128xf32>
    %cst_8 = arith.constant 0.000000e+00 : f32
    %8 = vector.broadcast %cst_8 : f32 to vector<8x128xf32>
    %c0_i32 = arith.constant 0 : i32
    %c8_i32 = arith.constant 8 : i32
    %9 = arith.muli %c0_i32, %c8_i32 : i32
    %10 = tpu.assume_multiple %9, 8 : i32
    %11 = arith.index_cast %10 : i32 to index
    %c0_9 = arith.constant 0 : index
    %12 = vector.load %arg8[%11, %c0_9] : memref<64x512xf32, #tpu.memory_space<vmem>>, vector<8x512xf32>
    %c0_10 = arith.constant 0 : index
    %c0_11 = arith.constant 0 : index
    %13 = vector.load %arg3[%c0_10, %c0_11] : memref<128x512xf32, #tpu.memory_space<vmem>>, vector<128x512xf32>
    %cst_12 = arith.constant dense<0.000000e+00> : vector<8x512xf32>
    %14 = tpu.matmul %7, %13, %cst_12 {dimension_numbers = #tpu.dot_dimension_numbers<[1], [0], [0], [1], [0, 0, 1, 1], [], []>} : vector<8x128xf32>, vector<128x512xf32>, vector<8x512xf32> -> vector<8x512xf32>
    %15 = arith.addf %12, %14 : vector<8x512xf32>
    %16 = vector.extract_strided_slice %15 {offsets = [0, 0], sizes = [8, 128], strides = [1, 1]} : vector<8x512xf32> to vector<8x128xf32>
    %17 = arith.negf %16 : vector<8x128xf32>
    %18 = math.exp %17 : vector<8x128xf32>
    %cst_13 = arith.constant 1.000000e+00 : f32
    %19 = vector.broadcast %cst_13 : f32 to vector<8x128xf32>
    %20 = arith.addf %19, %18 : vector<8x128xf32>
    %21 = arith.divf %19, %20 : vector<8x128xf32>
    %22 = vector.extract_strided_slice %15 {offsets = [0, 128], sizes = [8, 128], strides = [1, 1]} : vector<8x512xf32> to vector<8x128xf32>
    %23 = arith.negf %22 : vector<8x128xf32>
    %24 = math.exp %23 : vector<8x128xf32>
    %cst_14 = arith.constant 1.000000e+00 : f32
    %25 = vector.broadcast %cst_14 : f32 to vector<8x128xf32>
    %26 = arith.addf %25, %24 : vector<8x128xf32>
    %27 = arith.divf %25, %26 : vector<8x128xf32>
    %28 = vector.extract_strided_slice %15 {offsets = [0, 256], sizes = [8, 128], strides = [1, 1]} : vector<8x512xf32> to vector<8x128xf32>
    %29 = math.tanh %28 : vector<8x128xf32>
    %30 = vector.extract_strided_slice %15 {offsets = [0, 384], sizes = [8, 128], strides = [1, 1]} : vector<8x512xf32> to vector<8x128xf32>
    %31 = arith.negf %30 : vector<8x128xf32>
    %32 = math.exp %31 : vector<8x128xf32>
    %cst_15 = arith.constant 1.000000e+00 : f32
    %33 = vector.broadcast %cst_15 : f32 to vector<8x128xf32>
    %34 = arith.addf %33, %32 : vector<8x128xf32>
    %35 = arith.divf %33, %34 : vector<8x128xf32>
    %36 = arith.mulf %27, %8 : vector<8x128xf32>
    %37 = arith.mulf %21, %29 : vector<8x128xf32>
    %38 = arith.addf %36, %37 : vector<8x128xf32>
    %39 = math.tanh %38 : vector<8x128xf32>
    %40 = arith.mulf %35, %39 : vector<8x128xf32>
    %41 = arith.index_cast %10 : i32 to index
    %c0_16 = arith.constant 0 : index
    %42 = vector.load %arg9[%41, %c0_16] : memref<64x128xf32, #tpu.memory_space<vmem>>, vector<8x128xf32>
    tpu.vector_store %arg9[%41, %c0_16], %40 {strides = array<i32>} : memref<64x128xf32, #tpu.memory_space<vmem>>, vector<8x128xf32>,
    %c1_i32 = arith.constant 1 : i32
    %c8_i32_17 = arith.constant 8 : i32
    %43 = arith.muli %c1_i32, %c8_i32_17 : i32
    %44 = tpu.assume_multiple %43, 8 : i32
    %45 = arith.index_cast %44 : i32 to index
    %c0_18 = arith.constant 0 : index
    %46 = vector.load %arg8[%45, %c0_18] : memref<64x512xf32, #tpu.memory_space<vmem>>, vector<8x512xf32>
    %c0_19 = arith.constant 0 : index
    %c0_20 = arith.constant 0 : index
    %47 = vector.load %arg3[%c0_19, %c0_20] : memref<128x512xf32, #tpu.memory_space<vmem>>, vector<128x512xf32>
    %cst_21 = arith.constant dense<0.000000e+00> : vector<8x512xf32>
    %48 = tpu.matmul %40, %47, %cst_21 {dimension_numbers = #tpu.dot_dimension_numbers<[1], [0], [0], [1], [0, 0, 1, 1], [], []>} : vector<8x128xf32>, vector<128x512xf32>, vector<8x512xf32> -> vector<8x512xf32>
    %49 = arith.addf %46, %48 : vector<8x512xf32>
    %50 = vector.extract_strided_slice %49 {offsets = [0, 0], sizes = [8, 128], strides = [1, 1]} : vector<8x512xf32> to vector<8x128xf32>
    %51 = arith.negf %50 : vector<8x128xf32>
    %52 = math.exp %51 : vector<8x128xf32>
    %cst_22 = arith.constant 1.000000e+00 : f32
    %53 = vector.broadcast %cst_22 : f32 to vector<8x128xf32>
    %54 = arith.addf %53, %52 : vector<8x128xf32>
    %55 = arith.divf %53, %54 : vector<8x128xf32>
    %56 = vector.extract_strided_slice %49 {offsets = [0, 128], sizes = [8, 128], strides = [1, 1]} : vector<8x512xf32> to vector<8x128xf32>
    %57 = arith.negf %56 : vector<8x128xf32>
    %58 = math.exp %57 : vector<8x128xf32>
    %cst_23 = arith.constant 1.000000e+00 : f32
    %59 = vector.broadcast %cst_23 : f32 to vector<8x128xf32>
    %60 = arith.addf %59, %58 : vector<8x128xf32>
    %61 = arith.divf %59, %60 : vector<8x128xf32>
    %62 = vector.extract_strided_slice %49 {offsets = [0, 256], sizes = [8, 128], strides = [1, 1]} : vector<8x512xf32> to vector<8x128xf32>
    %63 = math.tanh %62 : vector<8x128xf32>
    %64 = vector.extract_strided_slice %49 {offsets = [0, 384], sizes = [8, 128], strides = [1, 1]} : vector<8x512xf32> to vector<8x128xf32>
    %65 = arith.negf %64 : vector<8x128xf32>
    %66 = math.exp %65 : vector<8x128xf32>
    %cst_24 = arith.constant 1.000000e+00 : f32
    %67 = vector.broadcast %cst_24 : f32 to vector<8x128xf32>
    %68 = arith.addf %67, %66 : vector<8x128xf32>
    %69 = arith.divf %67, %68 : vector<8x128xf32>
    %70 = arith.mulf %61, %38 : vector<8x128xf32>
    %71 = arith.mulf %55, %63 : vector<8x128xf32>
    %72 = arith.addf %70, %71 : vector<8x128xf32>
    %73 = math.tanh %72 : vector<8x128xf32>
    %74 = arith.mulf %69, %73 : vector<8x128xf32>
    %75 = arith.index_cast %44 : i32 to index
    %c0_25 = arith.constant 0 : index
    %76 = vector.load %arg9[%75, %c0_25] : memref<64x128xf32, #tpu.memory_space<vmem>>, vector<8x128xf32>
    tpu.vector_store %arg9[%75, %c0_25], %74 {strides = array<i32>} : memref<64x128xf32, #tpu.memory_space<vmem>>, vector<8x128xf32>,
    %c2_i32 = arith.constant 2 : i32
    %c8_i32_26 = arith.constant 8 : i32
    %77 = arith.muli %c2_i32, %c8_i32_26 : i32
    %78 = tpu.assume_multiple %77, 8 : i32
    %79 = arith.index_cast %78 : i32 to index
    %c0_27 = arith.constant 0 : index
    %80 = vector.load %arg8[%79, %c0_27] : memref<64x512xf32, #tpu.memory_space<vmem>>, vector<8x512xf32>
    %c0_28 = arith.constant 0 : index
    %c0_29 = arith.constant 0 : index
    %81 = vector.load %arg3[%c0_28, %c0_29] : memref<128x512xf32, #tpu.memory_space<vmem>>, vector<128x512xf32>
    %cst_30 = arith.constant dense<0.000000e+00> : vector<8x512xf32>
    %82 = tpu.matmul %74, %81, %cst_30 {dimension_numbers = #tpu.dot_dimension_numbers<[1], [0], [0], [1], [0, 0, 1, 1], [], []>} : vector<8x128xf32>, vector<128x512xf32>, vector<8x512xf32> -> vector<8x512xf32>
    %83 = arith.addf %80, %82 : vector<8x512xf32>
    %84 = vector.extract_strided_slice %83 {offsets = [0, 0], sizes = [8, 128], strides = [1, 1]} : vector<8x512xf32> to vector<8x128xf32>
    %85 = arith.negf %84 : vector<8x128xf32>
    %86 = math.exp %85 : vector<8x128xf32>
    %cst_31 = arith.constant 1.000000e+00 : f32
    %87 = vector.broadcast %cst_31 : f32 to vector<8x128xf32>
    %88 = arith.addf %87, %86 : vector<8x128xf32>
    %89 = arith.divf %87, %88 : vector<8x128xf32>
    %90 = vector.extract_strided_slice %83 {offsets = [0, 128], sizes = [8, 128], strides = [1, 1]} : vector<8x512xf32> to vector<8x128xf32>
    %91 = arith.negf %90 : vector<8x128xf32>
    %92 = math.exp %91 : vector<8x128xf32>
    %cst_32 = arith.constant 1.000000e+00 : f32
    %93 = vector.broadcast %cst_32 : f32 to vector<8x128xf32>
    %94 = arith.addf %93, %92 : vector<8x128xf32>
    %95 = arith.divf %93, %94 : vector<8x128xf32>
    %96 = vector.extract_strided_slice %83 {offsets = [0, 256], sizes = [8, 128], strides = [1, 1]} : vector<8x512xf32> to vector<8x128xf32>
    %97 = math.tanh %96 : vector<8x128xf32>
    %98 = vector.extract_strided_slice %83 {offsets = [0, 384], sizes = [8, 128], strides = [1, 1]} : vector<8x512xf32> to vector<8x128xf32>
    %99 = arith.negf %98 : vector<8x128xf32>
    %100 = math.exp %99 : vector<8x128xf32>
    %cst_33 = arith.constant 1.000000e+00 : f32
    %101 = vector.broadcast %cst_33 : f32 to vector<8x128xf32>
    %102 = arith.addf %101, %100 : vector<8x128xf32>
    %103 = arith.divf %101, %102 : vector<8x128xf32>
    %104 = arith.mulf %95, %72 : vector<8x128xf32>
    %105 = arith.mulf %89, %97 : vector<8x128xf32>
    %106 = arith.addf %104, %105 : vector<8x128xf32>
    %107 = math.tanh %106 : vector<8x128xf32>
    %108 = arith.mulf %103, %107 : vector<8x128xf32>
    %109 = arith.index_cast %78 : i32 to index
    %c0_34 = arith.constant 0 : index
    %110 = vector.load %arg9[%109, %c0_34] : memref<64x128xf32, #tpu.memory_space<vmem>>, vector<8x128xf32>
    tpu.vector_store %arg9[%109, %c0_34], %108 {strides = array<i32>} : memref<64x128xf32, #tpu.memory_space<vmem>>, vector<8x128xf32>,
    %c3_i32 = arith.constant 3 : i32
    %c8_i32_35 = arith.constant 8 : i32
    %111 = arith.muli %c3_i32, %c8_i32_35 : i32
    %112 = tpu.assume_multiple %111, 8 : i32
    %113 = arith.index_cast %112 : i32 to index
    %c0_36 = arith.constant 0 : index
    %114 = vector.load %arg8[%113, %c0_36] : memref<64x512xf32, #tpu.memory_space<vmem>>, vector<8x512xf32>
    %c0_37 = arith.constant 0 : index
    %c0_38 = arith.constant 0 : index
    %115 = vector.load %arg3[%c0_37, %c0_38] : memref<128x512xf32, #tpu.memory_space<vmem>>, vector<128x512xf32>
    %cst_39 = arith.constant dense<0.000000e+00> : vector<8x512xf32>
    %116 = tpu.matmul %108, %115, %cst_39 {dimension_numbers = #tpu.dot_dimension_numbers<[1], [0], [0], [1], [0, 0, 1, 1], [], []>} : vector<8x128xf32>, vector<128x512xf32>, vector<8x512xf32> -> vector<8x512xf32>
    %117 = arith.addf %114, %116 : vector<8x512xf32>
    %118 = vector.extract_strided_slice %117 {offsets = [0, 0], sizes = [8, 128], strides = [1, 1]} : vector<8x512xf32> to vector<8x128xf32>
    %119 = arith.negf %118 : vector<8x128xf32>
    %120 = math.exp %119 : vector<8x128xf32>
    %cst_40 = arith.constant 1.000000e+00 : f32
    %121 = vector.broadcast %cst_40 : f32 to vector<8x128xf32>
    %122 = arith.addf %121, %120 : vector<8x128xf32>
    %123 = arith.divf %121, %122 : vector<8x128xf32>
    %124 = vector.extract_strided_slice %117 {offsets = [0, 128], sizes = [8, 128], strides = [1, 1]} : vector<8x512xf32> to vector<8x128xf32>
    %125 = arith.negf %124 : vector<8x128xf32>
    %126 = math.exp %125 : vector<8x128xf32>
    %cst_41 = arith.constant 1.000000e+00 : f32
    %127 = vector.broadcast %cst_41 : f32 to vector<8x128xf32>
    %128 = arith.addf %127, %126 : vector<8x128xf32>
    %129 = arith.divf %127, %128 : vector<8x128xf32>
    %130 = vector.extract_strided_slice %117 {offsets = [0, 256], sizes = [8, 128], strides = [1, 1]} : vector<8x512xf32> to vector<8x128xf32>
    %131 = math.tanh %130 : vector<8x128xf32>
    %132 = vector.extract_strided_slice %117 {offsets = [0, 384], sizes = [8, 128], strides = [1, 1]} : vector<8x512xf32> to vector<8x128xf32>
    %133 = arith.negf %132 : vector<8x128xf32>
    %134 = math.exp %133 : vector<8x128xf32>
    %cst_42 = arith.constant 1.000000e+00 : f32
    %135 = vector.broadcast %cst_42 : f32 to vector<8x128xf32>
    %136 = arith.addf %135, %134 : vector<8x128xf32>
    %137 = arith.divf %135, %136 : vector<8x128xf32>
    %138 = arith.mulf %129, %106 : vector<8x128xf32>
    %139 = arith.mulf %123, %131 : vector<8x128xf32>
    %140 = arith.addf %138, %139 : vector<8x128xf32>
    %141 = math.tanh %140 : vector<8x128xf32>
    %142 = arith.mulf %137, %141 : vector<8x128xf32>
    %143 = arith.index_cast %112 : i32 to index
    %c0_43 = arith.constant 0 : index
    %144 = vector.load %arg9[%143, %c0_43] : memref<64x128xf32, #tpu.memory_space<vmem>>, vector<8x128xf32>
    tpu.vector_store %arg9[%143, %c0_43], %142 {strides = array<i32>} : memref<64x128xf32, #tpu.memory_space<vmem>>, vector<8x128xf32>,
    %c4_i32 = arith.constant 4 : i32
    %c8_i32_44 = arith.constant 8 : i32
    %145 = arith.muli %c4_i32, %c8_i32_44 : i32
    %146 = tpu.assume_multiple %145, 8 : i32
    %147 = arith.index_cast %146 : i32 to index
    %c0_45 = arith.constant 0 : index
    %148 = vector.load %arg8[%147, %c0_45] : memref<64x512xf32, #tpu.memory_space<vmem>>, vector<8x512xf32>
    %c0_46 = arith.constant 0 : index
    %c0_47 = arith.constant 0 : index
    %149 = vector.load %arg3[%c0_46, %c0_47] : memref<128x512xf32, #tpu.memory_space<vmem>>, vector<128x512xf32>
    %cst_48 = arith.constant dense<0.000000e+00> : vector<8x512xf32>
    %150 = tpu.matmul %142, %149, %cst_48 {dimension_numbers = #tpu.dot_dimension_numbers<[1], [0], [0], [1], [0, 0, 1, 1], [], []>} : vector<8x128xf32>, vector<128x512xf32>, vector<8x512xf32> -> vector<8x512xf32>
    %151 = arith.addf %148, %150 : vector<8x512xf32>
    %152 = vector.extract_strided_slice %151 {offsets = [0, 0], sizes = [8, 128], strides = [1, 1]} : vector<8x512xf32> to vector<8x128xf32>
    %153 = arith.negf %152 : vector<8x128xf32>
    %154 = math.exp %153 : vector<8x128xf32>
    %cst_49 = arith.constant 1.000000e+00 : f32
    %155 = vector.broadcast %cst_49 : f32 to vector<8x128xf32>
    %156 = arith.addf %155, %154 : vector<8x128xf32>
    %157 = arith.divf %155, %156 : vector<8x128xf32>
    %158 = vector.extract_strided_slice %151 {offsets = [0, 128], sizes = [8, 128], strides = [1, 1]} : vector<8x512xf32> to vector<8x128xf32>
    %159 = arith.negf %158 : vector<8x128xf32>
    %160 = math.exp %159 : vector<8x128xf32>
    %cst_50 = arith.constant 1.000000e+00 : f32
    %161 = vector.broadcast %cst_50 : f32 to vector<8x128xf32>
    %162 = arith.addf %161, %160 : vector<8x128xf32>
    %163 = arith.divf %161, %162 : vector<8x128xf32>
    %164 = vector.extract_strided_slice %151 {offsets = [0, 256], sizes = [8, 128], strides = [1, 1]} : vector<8x512xf32> to vector<8x128xf32>
    %165 = math.tanh %164 : vector<8x128xf32>
    %166 = vector.extract_strided_slice %151 {offsets = [0, 384], sizes = [8, 128], strides = [1, 1]} : vector<8x512xf32> to vector<8x128xf32>
    %167 = arith.negf %166 : vector<8x128xf32>
    %168 = math.exp %167 : vector<8x128xf32>
    %cst_51 = arith.constant 1.000000e+00 : f32
    %169 = vector.broadcast %cst_51 : f32 to vector<8x128xf32>
    %170 = arith.addf %169, %168 : vector<8x128xf32>
    %171 = arith.divf %169, %170 : vector<8x128xf32>
    %172 = arith.mulf %163, %140 : vector<8x128xf32>
    %173 = arith.mulf %157, %165 : vector<8x128xf32>
    %174 = arith.addf %172, %173 : vector<8x128xf32>
    %175 = math.tanh %174 : vector<8x128xf32>
    %176 = arith.mulf %171, %175 : vector<8x128xf32>
    %177 = arith.index_cast %146 : i32 to index
    %c0_52 = arith.constant 0 : index
    %178 = vector.load %arg9[%177, %c0_52] : memref<64x128xf32, #tpu.memory_space<vmem>>, vector<8x128xf32>
    tpu.vector_store %arg9[%177, %c0_52], %176 {strides = array<i32>} : memref<64x128xf32, #tpu.memory_space<vmem>>, vector<8x128xf32>,
    %c5_i32 = arith.constant 5 : i32
    %c8_i32_53 = arith.constant 8 : i32
    %179 = arith.muli %c5_i32, %c8_i32_53 : i32
    %180 = tpu.assume_multiple %179, 8 : i32
    %181 = arith.index_cast %180 : i32 to index
    %c0_54 = arith.constant 0 : index
    %182 = vector.load %arg8[%181, %c0_54] : memref<64x512xf32, #tpu.memory_space<vmem>>, vector<8x512xf32>
    %c0_55 = arith.constant 0 : index
    %c0_56 = arith.constant 0 : index
    %183 = vector.load %arg3[%c0_55, %c0_56] : memref<128x512xf32, #tpu.memory_space<vmem>>, vector<128x512xf32>
    %cst_57 = arith.constant dense<0.000000e+00> : vector<8x512xf32>
    %184 = tpu.matmul %176, %183, %cst_57 {dimension_numbers = #tpu.dot_dimension_numbers<[1], [0], [0], [1], [0, 0, 1, 1], [], []>} : vector<8x128xf32>, vector<128x512xf32>, vector<8x512xf32> -> vector<8x512xf32>
    %185 = arith.addf %182, %184 : vector<8x512xf32>
    %186 = vector.extract_strided_slice %185 {offsets = [0, 0], sizes = [8, 128], strides = [1, 1]} : vector<8x512xf32> to vector<8x128xf32>
    %187 = arith.negf %186 : vector<8x128xf32>
    %188 = math.exp %187 : vector<8x128xf32>
    %cst_58 = arith.constant 1.000000e+00 : f32
    %189 = vector.broadcast %cst_58 : f32 to vector<8x128xf32>
    %190 = arith.addf %189, %188 : vector<8x128xf32>
    %191 = arith.divf %189, %190 : vector<8x128xf32>
    %192 = vector.extract_strided_slice %185 {offsets = [0, 128], sizes = [8, 128], strides = [1, 1]} : vector<8x512xf32> to vector<8x128xf32>
    %193 = arith.negf %192 : vector<8x128xf32>
    %194 = math.exp %193 : vector<8x128xf32>
    %cst_59 = arith.constant 1.000000e+00 : f32
    %195 = vector.broadcast %cst_59 : f32 to vector<8x128xf32>
    %196 = arith.addf %195, %194 : vector<8x128xf32>
    %197 = arith.divf %195, %196 : vector<8x128xf32>
    %198 = vector.extract_strided_slice %185 {offsets = [0, 256], sizes = [8, 128], strides = [1, 1]} : vector<8x512xf32> to vector<8x128xf32>
    %199 = math.tanh %198 : vector<8x128xf32>
    %200 = vector.extract_strided_slice %185 {offsets = [0, 384], sizes = [8, 128], strides = [1, 1]} : vector<8x512xf32> to vector<8x128xf32>
    %201 = arith.negf %200 : vector<8x128xf32>
    %202 = math.exp %201 : vector<8x128xf32>
    %cst_60 = arith.constant 1.000000e+00 : f32
    %203 = vector.broadcast %cst_60 : f32 to vector<8x128xf32>
    %204 = arith.addf %203, %202 : vector<8x128xf32>
    %205 = arith.divf %203, %204 : vector<8x128xf32>
    %206 = arith.mulf %197, %174 : vector<8x128xf32>
    %207 = arith.mulf %191, %199 : vector<8x128xf32>
    %208 = arith.addf %206, %207 : vector<8x128xf32>
    %209 = math.tanh %208 : vector<8x128xf32>
    %210 = arith.mulf %205, %209 : vector<8x128xf32>
    %211 = arith.index_cast %180 : i32 to index
    %c0_61 = arith.constant 0 : index
    %212 = vector.load %arg9[%211, %c0_61] : memref<64x128xf32, #tpu.memory_space<vmem>>, vector<8x128xf32>
    tpu.vector_store %arg9[%211, %c0_61], %210 {strides = array<i32>} : memref<64x128xf32, #tpu.memory_space<vmem>>, vector<8x128xf32>,
    %c6_i32 = arith.constant 6 : i32
    %c8_i32_62 = arith.constant 8 : i32
    %213 = arith.muli %c6_i32, %c8_i32_62 : i32
    %214 = tpu.assume_multiple %213, 8 : i32
    %215 = arith.index_cast %214 : i32 to index
    %c0_63 = arith.constant 0 : index
    %216 = vector.load %arg8[%215, %c0_63] : memref<64x512xf32, #tpu.memory_space<vmem>>, vector<8x512xf32>
    %c0_64 = arith.constant 0 : index
    %c0_65 = arith.constant 0 : index
    %217 = vector.load %arg3[%c0_64, %c0_65] : memref<128x512xf32, #tpu.memory_space<vmem>>, vector<128x512xf32>
    %cst_66 = arith.constant dense<0.000000e+00> : vector<8x512xf32>
    %218 = tpu.matmul %210, %217, %cst_66 {dimension_numbers = #tpu.dot_dimension_numbers<[1], [0], [0], [1], [0, 0, 1, 1], [], []>} : vector<8x128xf32>, vector<128x512xf32>, vector<8x512xf32> -> vector<8x512xf32>
    %219 = arith.addf %216, %218 : vector<8x512xf32>
    %220 = vector.extract_strided_slice %219 {offsets = [0, 0], sizes = [8, 128], strides = [1, 1]} : vector<8x512xf32> to vector<8x128xf32>
    %221 = arith.negf %220 : vector<8x128xf32>
    %222 = math.exp %221 : vector<8x128xf32>
    %cst_67 = arith.constant 1.000000e+00 : f32
    %223 = vector.broadcast %cst_67 : f32 to vector<8x128xf32>
    %224 = arith.addf %223, %222 : vector<8x128xf32>
    %225 = arith.divf %223, %224 : vector<8x128xf32>
    %226 = vector.extract_strided_slice %219 {offsets = [0, 128], sizes = [8, 128], strides = [1, 1]} : vector<8x512xf32> to vector<8x128xf32>
    %227 = arith.negf %226 : vector<8x128xf32>
    %228 = math.exp %227 : vector<8x128xf32>
    %cst_68 = arith.constant 1.000000e+00 : f32
    %229 = vector.broadcast %cst_68 : f32 to vector<8x128xf32>
    %230 = arith.addf %229, %228 : vector<8x128xf32>
    %231 = arith.divf %229, %230 : vector<8x128xf32>
    %232 = vector.extract_strided_slice %219 {offsets = [0, 256], sizes = [8, 128], strides = [1, 1]} : vector<8x512xf32> to vector<8x128xf32>
    %233 = math.tanh %232 : vector<8x128xf32>
    %234 = vector.extract_strided_slice %219 {offsets = [0, 384], sizes = [8, 128], strides = [1, 1]} : vector<8x512xf32> to vector<8x128xf32>
    %235 = arith.negf %234 : vector<8x128xf32>
    %236 = math.exp %235 : vector<8x128xf32>
    %cst_69 = arith.constant 1.000000e+00 : f32
    %237 = vector.broadcast %cst_69 : f32 to vector<8x128xf32>
    %238 = arith.addf %237, %236 : vector<8x128xf32>
    %239 = arith.divf %237, %238 : vector<8x128xf32>
    %240 = arith.mulf %231, %208 : vector<8x128xf32>
    %241 = arith.mulf %225, %233 : vector<8x128xf32>
    %242 = arith.addf %240, %241 : vector<8x128xf32>
    %243 = math.tanh %242 : vector<8x128xf32>
    %244 = arith.mulf %239, %243 : vector<8x128xf32>
    %245 = arith.index_cast %214 : i32 to index
    %c0_70 = arith.constant 0 : index
    %246 = vector.load %arg9[%245, %c0_70] : memref<64x128xf32, #tpu.memory_space<vmem>>, vector<8x128xf32>
    tpu.vector_store %arg9[%245, %c0_70], %244 {strides = array<i32>} : memref<64x128xf32, #tpu.memory_space<vmem>>, vector<8x128xf32>,
    %c7_i32 = arith.constant 7 : i32
    %c8_i32_71 = arith.constant 8 : i32
    %247 = arith.muli %c7_i32, %c8_i32_71 : i32
    %248 = tpu.assume_multiple %247, 8 : i32
    %249 = arith.index_cast %248 : i32 to index
    %c0_72 = arith.constant 0 : index
    %250 = vector.load %arg8[%249, %c0_72] : memref<64x512xf32, #tpu.memory_space<vmem>>, vector<8x512xf32>
    %c0_73 = arith.constant 0 : index
    %c0_74 = arith.constant 0 : index
    %251 = vector.load %arg3[%c0_73, %c0_74] : memref<128x512xf32, #tpu.memory_space<vmem>>, vector<128x512xf32>
    %cst_75 = arith.constant dense<0.000000e+00> : vector<8x512xf32>
    %252 = tpu.matmul %244, %251, %cst_75 {dimension_numbers = #tpu.dot_dimension_numbers<[1], [0], [0], [1], [0, 0, 1, 1], [], []>} : vector<8x128xf32>, vector<128x512xf32>, vector<8x512xf32> -> vector<8x512xf32>
    %253 = arith.addf %250, %252 : vector<8x512xf32>
    %254 = vector.extract_strided_slice %253 {offsets = [0, 0], sizes = [8, 128], strides = [1, 1]} : vector<8x512xf32> to vector<8x128xf32>
    %255 = arith.negf %254 : vector<8x128xf32>
    %256 = math.exp %255 : vector<8x128xf32>
    %cst_76 = arith.constant 1.000000e+00 : f32
    %257 = vector.broadcast %cst_76 : f32 to vector<8x128xf32>
    %258 = arith.addf %257, %256 : vector<8x128xf32>
    %259 = arith.divf %257, %258 : vector<8x128xf32>
    %260 = vector.extract_strided_slice %253 {offsets = [0, 128], sizes = [8, 128], strides = [1, 1]} : vector<8x512xf32> to vector<8x128xf32>
    %261 = arith.negf %260 : vector<8x128xf32>
    %262 = math.exp %261 : vector<8x128xf32>
    %cst_77 = arith.constant 1.000000e+00 : f32
    %263 = vector.broadcast %cst_77 : f32 to vector<8x128xf32>
    %264 = arith.addf %263, %262 : vector<8x128xf32>
    %265 = arith.divf %263, %264 : vector<8x128xf32>
    %266 = vector.extract_strided_slice %253 {offsets = [0, 256], sizes = [8, 128], strides = [1, 1]} : vector<8x512xf32> to vector<8x128xf32>
    %267 = math.tanh %266 : vector<8x128xf32>
    %268 = vector.extract_strided_slice %253 {offsets = [0, 384], sizes = [8, 128], strides = [1, 1]} : vector<8x512xf32> to vector<8x128xf32>
    %269 = arith.negf %268 : vector<8x128xf32>
    %270 = math.exp %269 : vector<8x128xf32>
    %cst_78 = arith.constant 1.000000e+00 : f32
    %271 = vector.broadcast %cst_78 : f32 to vector<8x128xf32>
    %272 = arith.addf %271, %270 : vector<8x128xf32>
    %273 = arith.divf %271, %272 : vector<8x128xf32>
    %274 = arith.mulf %265, %242 : vector<8x128xf32>
    %275 = arith.mulf %259, %267 : vector<8x128xf32>
    %276 = arith.addf %274, %275 : vector<8x128xf32>
    %277 = math.tanh %276 : vector<8x128xf32>
    %278 = arith.mulf %273, %277 : vector<8x128xf32>
    %279 = arith.index_cast %248 : i32 to index
    %c0_79 = arith.constant 0 : index
    %280 = vector.load %arg9[%279, %c0_79] : memref<64x128xf32, #tpu.memory_space<vmem>>, vector<8x128xf32>
    tpu.vector_store %arg9[%279, %c0_79], %278 {strides = array<i32>} : memref<64x128xf32, #tpu.memory_space<vmem>>, vector<8x128xf32>,
    %c8_i32_80 = arith.constant 8 : i32
    %c0_81 = arith.constant 0 : index
    %c0_82 = arith.constant 0 : index
    %281 = vector.load %arg9[%c0_81, %c0_82] : memref<64x128xf32, #tpu.memory_space<vmem>>, vector<64x128xf32>
    %c0_83 = arith.constant 0 : index
    %c0_84 = arith.constant 0 : index
    %282 = vector.load %arg5[%c0_83, %c0_84] : memref<128x128xf32, #tpu.memory_space<vmem>>, vector<128x128xf32>
    %cst_85 = arith.constant dense<0.000000e+00> : vector<64x128xf32>
    %283 = tpu.matmul %281, %282, %cst_85 {dimension_numbers = #tpu.dot_dimension_numbers<[1], [0], [0], [1], [0, 0, 1, 1], [], []>} : vector<64x128xf32>, vector<128x128xf32>, vector<64x128xf32> -> vector<64x128xf32>
    %c0_86 = arith.constant 0 : index
    %c0_87 = arith.constant 0 : index
    %284 = vector.load %arg6[%c0_86, %c0_87] : memref<1x128xf32, #tpu.memory_space<vmem>>, vector<1x128xf32>
    %285 = vector.broadcast %284 : vector<1x128xf32> to vector<64x128xf32>
    %286 = arith.addf %283, %285 : vector<64x128xf32>
    %c0_88 = arith.constant 0 : index
    %c0_89 = arith.constant 0 : index
    %287 = vector.load %arg7[%c0_88, %c0_89] : memref<64x128xf32, #tpu.memory_space<vmem>>, vector<64x128xf32>
    tpu.vector_store %arg7[%c0_88, %c0_89], %286 {strides = array<i32>} : memref<64x128xf32, #tpu.memory_space<vmem>>, vector<64x128xf32>,
    return
  }
  func.func @transform_0(%arg0: i32) -> (i32, i32) {
    %c0_i32 = arith.constant 0 : i32
    %c0_i32_0 = arith.constant 0 : i32
    %c0_i32_1 = arith.constant 0 : i32
    return %c0_i32, %c0_i32_0 : i32, i32
  }
  func.func @transform_1(%arg0: i32) -> (i32, i32) {
    %c0_i32 = arith.constant 0 : i32
    %c0_i32_0 = arith.constant 0 : i32
    %c0_i32_1 = arith.constant 0 : i32
    return %c0_i32, %c0_i32_0 : i32, i32
  }
  func.func @transform_2(%arg0: i32) -> (i32, i32) {
    %c0_i32 = arith.constant 0 : i32
    %c0_i32_0 = arith.constant 0 : i32
    %c0_i32_1 = arith.constant 0 : i32
    return %c0_i32, %c0_i32_0 : i32, i32
  }
  func.func @transform_3(%arg0: i32) -> (i32, i32) {
    %c0_i32 = arith.constant 0 : i32
    %c0_i32_0 = arith.constant 0 : i32
    %c0_i32_1 = arith.constant 0 : i32
    return %c0_i32, %c0_i32_0 : i32, i32
  }
  func.func @transform_4(%arg0: i32) -> (i32, i32) {
    %c0_i32 = arith.constant 0 : i32
    %c0_i32_0 = arith.constant 0 : i32
    %c0_i32_1 = arith.constant 0 : i32
    return %c0_i32, %c0_i32_0 : i32, i32
  }
  func.func @transform_5(%arg0: i32) -> (i32, i32) {
    %c0_i32 = arith.constant 0 : i32
    %c0_i32_0 = arith.constant 0 : i32
    %c0_i32_1 = arith.constant 0 : i32
    return %c0_i32, %c0_i32_0 : i32, i32
  }
  func.func @transform_6(%arg0: i32) -> (i32, i32) {
    %c0_i32 = arith.constant 0 : i32
    %c0_i32_0 = arith.constant 0 : i32
    %c0_i32_1 = arith.constant 0 : i32
    return %c0_i32, %c0_i32_0 : i32, i32
  }
}

</mosaic_0001>

<bundles_post_ra>
// kernel: tpu_custom_call.1
= control target key start
LH: loop header
LB: loop body
LE: loop exit
PB: predicated region body
PF: predicated region fallthrough
CT: control target
= control target key end

     0   :  { %11 = vsyncpa [#allocation5], 0  ;;  %s3890_s0 = inlined_call_operand.vmem [shape: f32[64,16], index: 0, kind: input, shape index: {}]   ;;  %s3891_s1 = inlined_call_operand.vmem [shape: f32[16,512], index: 1, kind: input, shape index: {}]   ;;  %s3892_s2 = inlined_call_operand.hbm [shape: f32[128,512], index: 2, kind: input, shape index: {}]   ;;  %s3893_s3 = inlined_call_operand.vmem [shape: f32[1,512], index: 3, kind: input, shape index: {}]   ;;  %s3894_s4 = inlined_call_operand.hbm [shape: f32[128,128], index: 4, kind: input, shape index: {}]   ;;  %s3895_s5 = inlined_call_operand.vmem [shape: f32[1,128], index: 5, kind: input, shape index: {}]   ;;  %s3896_s6 = inlined_call_operand.hbm [shape: f32[64,128], index: 6, kind: output, shape index: {}]  }
   0x1   :  { %12 = vsyncpa [#allocation8], 0 }
   0x2   :  { %13 = vsyncpa [#allocation6], 0  ;;  %s2796_s21 = smov [#allocation4]  }
   0x3   :  { %s23_s22 = sshll.u32 %s2796_s21, 4  ;;  %s24_s22 = int_to_ptr.vmem [resolvable:$true] %s23_s22 }
   0x4   :  { %s2738_s23 = scalar_lea.vmem %s24_s22, 8192  ;;  %p2743_p1 = scmp.lt.s32.totalorder %s24_s22, %s24_s22 }
   0x5   :  { %p2739_p0 = scmp.ne.s32.totalorder %s24_s22, %s2738_s23  ;;  %p2744_p2 = scmp.lt.s32.totalorder %s2738_s23, %s2738_s23 }
   0x7   :  { %p2745_p3 = por %p2744_p2, %p2743_p1 }
   0x9   :  { %p2746_p4 = pnand %p2745_p3, %p2739_p0 }
   0xb   :  { %2749 = shalt.err (!%p2746_p4)
}
   0xc   :  { %s2797_s24 = smov 512   ;;  %s2798_s25 = smov 32  }
   0xd   :  { %29 = dma.hbm_to_vmem [thread:$0]  %s3892_s2, 8192, %s24_s22, [#allocation5], %s2797_s24, %s2797_s24, %s2798_s25  }
   0xe   :  { %s2799_s28 = smov [#allocation7]  }
   0xf   :  { %s37_s29 = sshll.u32 %s2799_s28, 4  ;;  %s38_s29 = int_to_ptr.vmem [resolvable:$true] %s37_s29 }
  0x10   :  { %s2758_s30 = scalar_lea.vmem %s38_s29, 2048  ;;  %p2763_p6 = scmp.lt.s32.totalorder %s38_s29, %s38_s29 }
  0x11   :  { %p2759_p5 = scmp.ne.s32.totalorder %s38_s29, %s2758_s30  ;;  %p2764_p7 = scmp.lt.s32.totalorder %s2758_s30, %s2758_s30 }
  0x13   :  { %p2765_p8 = por %p2764_p7, %p2763_p6 }
  0x15   :  { %p2766_p9 = pnand %p2765_p8, %p2759_p5 }
  0x17   :  { %2769 = shalt.err (!%p2766_p9)
}
  0x18   :  { %s2800_s7 = smov 128   ;;  %s2801_s8 = smov 8  }
  0x19   :  { %43 = dma.hbm_to_vmem [thread:$0]  %s3894_s4, 2048, %s38_s29, [#allocation8], %s2800_s7, %s2800_s7, %s2801_s8  }
  0x1a   :  { %2790 = dma.done.wait [#allocation5], 8192  }
  0x1b   :  { %2791 = vsyncadd [#allocation5], 4294959104 }
  0x1c   :  { %2792 = dma.done.wait [#allocation8], 2048  }
  0x1d   :  { %2793 = vsyncadd [#allocation8], 4294965248  ;;  %v3897_v0 = vmov 0.0   ;;  %v67_v1 = vld [vmem:[%s3891_s1 + $0x38] sm:$0xff]  ;;  %v66_v2 = vld [vmem:[%s3891_s1 + $0x30] sm:$0xff]  ;;  %vm90_vm0 = vcmask 130048  }
  0x1e   :  { %292 = vmatprep.mubr.f32.mxu1 %v3897_v0  ;;  %179 = vmatprep.mubr.f32.mxu0 %v3897_v0  ;;  %v63_v3 = vld [vmem:[%s3891_s1 + $0x18] sm:$0xff]  ;;  %v62_v4 = vld [vmem:[%s3891_s1 + $0x10] sm:$0xff]  ;;  %v2865_v5 = vld [vmem:[%s3890_s0] sm:$0xff] }
  0x1f   :  { %256 = vmatprep.subr.mxu1 %v67_v1  ;;  %v2867_v6 = vld [vmem:[#allocation4 + $0x1e8] sm:$0xff]  ;;  %v2869_v7 = vld [vmem:[#allocation4 + $0x1e0] sm:$0xff]  ;;  %v2903_v15 = vld [vmem:[%s3890_s0 + $0x10] sm:$0xff] }
  0x20   :  { %257 = vmatpush1.msra.mxu1 %v66_v2  ;;  %v2871_v8 = vld [vmem:[#allocation4 + $0x1c8] sm:$0xff]  ;;  %v2876_v9 = vld [vmem:[#allocation4 + $0x1c0] sm:$0xff]  ;;  %v2929_v22 = vld [vmem:[%s3890_s0 + $0x18] sm:$0xff] }
  0x21   :  { %258 = vmatprep.subr.mxu1 %v63_v3  ;;  %v2883_v10 = vld [vmem:[%s3890_s0 + $0x8] sm:$0xff]  ;;  %v2888_v12 = vld [vmem:[#allocation4 + $0x1a0] sm:$0xff]  ;;  %v2998_v39 = vld [vmem:[%s3890_s0 + $0x30] sm:$0xff] }
  0x22   :  { %259 = vmatpush1.msra.mxu1 %v62_v4  ;;  %v2885_v11 = vld [vmem:[#allocation4 + $0x1a8] sm:$0xff]  ;;  %v2896_v14 = vld [vmem:[#allocation4 + $0x180] sm:$0xff]  ;;  %v3020_v44 = vld [vmem:[%s3890_s0 + $0x38] sm:$0xff] }
  0x23   :  { %2493 = vmatmul.mubr.msk.f32.vlgmr.msra.gmra.mxu1 %vm90_vm0, %v2865_v5  ;;  %444 = vmatprep.subr.mxu1 %v2867_v6  ;;  %v2891_v13 = vld [vmem:[#allocation4 + $0x188] sm:$0xff]  ;;  %v2908_v17 = vld [vmem:[#allocation4 + $0x160] sm:$0xff]  ;;  %v3040_v49 = vld [vmem:[#allocation4 + $0x1f8] sm:$0xff] }
  0x24   :  { %445 = vmatpush1.msra.mxu1 %v2869_v7  ;;  %298 = vmatprep.mubr.f32.mxu1 %v3897_v0  ;;  %v2905_v16 = vld [vmem:[#allocation4 + $0x168] sm:$0xff]  ;;  %v2919_v20 = vld [vmem:[#allocation4 + $0x140] sm:$0xff]  ;;  %3982 = vst [vmem:[#allocation24_spill] sm:$0xff] %v3040_v49  ;;  %v3043_v50 = vld [vmem:[#allocation4 + $0x1f0] sm:$0xff] }
  0x25   :  { %446 = vmatprep.subr.mxu1 %v2871_v8  ;;  %v2911_v18 = vld [vmem:[#allocation4 + $0x148] sm:$0xff]  ;;  %v64_v21 = vld [vmem:[%s3891_s1 + $0x20] sm:$0xff]  ;;  %v3047_v51 = vld [vmem:[#allocation4 + $0x1d8] sm:$0xff] }
  0x26   :  { %447 = vmatpush1.msra.mxu1 %v2876_v9  ;;  %v65_v19 = vld [vmem:[%s3891_s1 + $0x28] sm:$0xff]  ;;  %v2934_v24 = vld [vmem:[#allocation4 + $0x120] sm:$0xff]  ;;  %v3052_v52 = vld [vmem:[#allocation4 + $0x1d0] sm:$0xff] }
  0x27   :  { %2494 = vmatmul.mubr.msk.f32.gmra.mxu1 %vm90_vm0, %v2883_v10  ;;  %448 = vmatprep.subr.mxu1 %v2885_v11  ;;  %v2931_v23 = vld [vmem:[#allocation4 + $0x128] sm:$0xff]  ;;  %v2945_v27 = vld [vmem:[#allocation4 + $0x100] sm:$0xff]  ;;  %v3055_v53 = vld [vmem:[#allocation4 + $0x1b8] sm:$0xff] }
  0x28   :  { %449 = vmatpush1.msra.mxu1 %v2888_v12  ;;  %304 = vmatprep.mubr.f32.mxu1 %v3897_v0  ;;  %v2937_v25 = vld [vmem:[#allocation4 + $0x108] sm:$0xff]  ;;  %v60_v28 = vld [vmem:[%s3891_s1] sm:$0xff]  ;;  %v3059_v54 = vld [vmem:[#allocation4 + $0x1b0] sm:$0xff] }
  0x29   :  { %450 = vmatprep.subr.mxu1 %v2891_v13  ;;  %143 = vmatprep.subr.mxu0 %v65_v19  ;;  %v61_v26 = vld [vmem:[%s3891_s1 + $0x8] sm:$0xff]  ;;  %v2955_v29 = vld [vmem:[%s3890_s0 + $0x20] sm:$0xff]  ;;  %v3063_v55 = vld [vmem:[#allocation4 + $0x198] sm:$0xff] }
  0x2a   :  { %451 = vmatpush1.msra.mxu1 %v2896_v14  ;;  %144 = vmatpush1.msra.mxu0 %v64_v21  ;;  %v2957_v30 = vld [vmem:[#allocation4 + $0xe8] sm:$0xff]  ;;  %v2960_v31 = vld [vmem:[#allocation4 + $0xe0] sm:$0xff]  ;;  %v3067_v56 = vld [vmem:[#allocation4 + $0x190] sm:$0xff] }
  0x2b   :  { %2495 = vmatmul.mubr.msk.f32.gmra.mxu1 %vm90_vm0, %v2903_v15  ;;  %452 = vmatprep.subr.mxu1 %v2905_v16  ;;  %3971 = vst [vmem:[#allocation13_spill] sm:$0xff] %v2960_v31  ;;  %v2963_v32 = vld [vmem:[#allocation4 + $0xc8] sm:$0xff]  ;;  %v2968_v33 = vld [vmem:[#allocation4 + $0xc0] sm:$0xff]  ;;  %v3071_v57 = vld [vmem:[#allocation4 + $0x178] sm:$0xff] }
  0x2c   :  { %453 = vmatpush1.msra.mxu1 %v2908_v17  ;;  %310 = vmatprep.mubr.f32.mxu1 %v3897_v0  ;;  %3972 = vst [vmem:[#allocation14_spill] sm:$0xff] %v2963_v32  ;;  %3973 = vst [vmem:[#allocation15_spill] sm:$0xff] %v2968_v33  ;;  %v2975_v34 = vld [vmem:[%s3890_s0 + $0x28] sm:$0xff]  ;;  %v2980_v36 = vld [vmem:[#allocation4 + $0xa0] sm:$0xff] }
  0x2d   :  { %454 = vmatprep.subr.mxu1 %v2911_v18  ;;  %145 = vmatprep.subr.mxu0 %v61_v26  ;;  %v2977_v35 = vld [vmem:[#allocation4 + $0xa8] sm:$0xff]  ;;  %v2991_v38 = vld [vmem:[#allocation4 + $0x80] sm:$0xff]  ;;  %v3076_v58 = vld [vmem:[#allocation4 + $0x170] sm:$0xff] }
  0x2e   :  { %455 = vmatpush1.msra.mxu1 %v2919_v20  ;;  %146 = vmatpush1.msra.mxu0 %v60_v28  ;;  %v2985_v37 = vld [vmem:[#allocation4 + $0x88] sm:$0xff]  ;;  %v3003_v41 = vld [vmem:[#allocation4 + $0x60] sm:$0xff]  ;;  %v3080_v59 = vld [vmem:[#allocation4 + $0x158] sm:$0xff] }
  0x2f   :  { %2496 = vmatmul.mubr.msk.f32.gmra.mxu1 %vm90_vm0, %v2929_v22  ;;  %456 = vmatprep.subr.mxu1 %v2931_v23  ;;  %v3000_v40 = vld [vmem:[#allocation4 + $0x68] sm:$0xff]  ;;  %3975 = vst [vmem:[#allocation17_spill] sm:$0xff] %v3003_v41  ;;  %v3013_v43 = vld [vmem:[#allocation4 + $0x40] sm:$0xff]  ;;  %v3084_v60 = vld [vmem:[#allocation4 + $0x150] sm:$0xff] }
  0x30   :  { %457 = vmatpush1.msra.mxu1 %v2934_v24  ;;  %316 = vmatprep.mubr.f32.mxu1 %v3897_v0  ;;  %3974 = vst [vmem:[#allocation16_spill] sm:$0xff] %v3000_v40  ;;  %v3007_v42 = vld [vmem:[#allocation4 + $0x48] sm:$0xff]  ;;  %3977 = vst [vmem:[#allocation19_spill] sm:$0xff] %v3013_v43  ;;  %v3025_v46 = vld [vmem:[#allocation4 + $0x20] sm:$0xff] }
  0x31   :  { %458 = vmatprep.subr.mxu1 %v2937_v25  ;;  %2485 = vmatmul.mubr.msk.f32.vlgmr.msra.gmra.mxu0 %vm90_vm0, %v2865_v5  ;;  %3976 = vst [vmem:[#allocation18_spill] sm:$0xff] %v3007_v42  ;;  %v3022_v45 = vld [vmem:[#allocation4 + $0x28] sm:$0xff]  ;;  %3979 = vst [vmem:[#allocation21_spill] sm:$0xff] %v3025_v46  ;;  %v3036_v48 = vld [vmem:[#allocation4] sm:$0xff] }
  0x32   :  { %459 = vmatpush1.msra.mxu1 %v2945_v27  ;;  %686 = vmatprep.subr.mxu0 %v2867_v6  ;;  %3978 = vst [vmem:[#allocation20_spill] sm:$0xff] %v3022_v45  ;;  %v3029_v47 = vld [vmem:[#allocation4 + $0x8] sm:$0xff]  ;;  %3981 = vst [vmem:[#allocation23_spill] sm:$0xff] %v3036_v48  ;;  %v3088_v61 = vld [vmem:[#allocation4 + $0x138] sm:$0xff] }
  0x33   :  { %2497 = vmatmul.mubr.msk.f32.gmra.mxu1 %vm90_vm0, %v2955_v29  ;;  %460 = vmatprep.subr.mxu1 %v2957_v30  ;;  %3980 = vst [vmem:[#allocation22_spill] sm:$0xff] %v3029_v47  ;;  %v3092_v62 = vld [vmem:[#allocation4 + $0x130] sm:$0xff]  ;;  %v3096_v63 = vld [vmem:[#allocation4 + $0x118] sm:$0xff] }
  0x34   :  { %461 = vmatpush1.msra.mxu1 %v2960_v31  ;;  %322 = vmatprep.mubr.f32.mxu1 %v3897_v0  ;;  %v3101_v1 = vld [vmem:[#allocation4 + $0x110] sm:$0xff]  ;;  %v3105_v2 = vld [vmem:[#allocation4 + $0xf8] sm:$0xff] }
  0x35   :  { %462 = vmatprep.subr.mxu1 %v2963_v32  ;;  %687 = vmatpush1.msra.mxu0 %v2869_v7  ;;  %v3109_v3 = vld [vmem:[#allocation4 + $0xf0] sm:$0xff]  ;;  %v3113_v4 = vld [vmem:[#allocation4 + $0xd8] sm:$0xff] }
  0x36   :  { %463 = vmatpush1.msra.mxu1 %v2968_v33  ;;  %185 = vmatprep.mubr.f32.mxu0 %v3897_v0  ;;  %v3117_v5 = vld [vmem:[#allocation4 + $0xd0] sm:$0xff]  ;;  %v3130_v19 = vld [vmem:[#allocation4 + $0x98] sm:$0xff] }
  0x37   :  { %2498 = vmatmul.mubr.msk.f32.gmra.mxu1 %vm90_vm0, %v2975_v34  ;;  %464 = vmatprep.subr.mxu1 %v2977_v35  ;;  %v3134_v21 = vld [vmem:[#allocation4 + $0x90] sm:$0xff]  ;;  %v3146_v28 = vld [vmem:[#allocation4 + $0x58] sm:$0xff] }
  0x38   :  { %465 = vmatpush1.msra.mxu1 %v2980_v36  ;;  %328 = vmatprep.mubr.f32.mxu1 %v3897_v0  ;;  %3983 = vst [vmem:[#allocation25_spill] sm:$0xff] %v3134_v21  ;;  %v3142_v26 = vld [vmem:[#allocation4 + $0x70] sm:$0xff]  ;;  %3986 = vst [vmem:[#allocation28_spill] sm:$0xff] %v3146_v28 }
  0x39   :  { %466 = vmatprep.subr.mxu1 %v2985_v37  ;;  %688 = vmatprep.subr.mxu0 %v2871_v8  ;;  %3985 = vst [vmem:[#allocation27_spill] sm:$0xff] %v3142_v26 }
  0x3a   :  { %467 = vmatpush1.msra.mxu1 %v2991_v38  ;;  %2486 = vmatmul.mubr.msk.f32.gmra.mxu0 %vm90_vm0, %v2883_v10  ;;  %v3121_v10 = vld [vmem:[#allocation4 + $0xb8] sm:$0xff] }
  0x3b   :  { %2499 = vmatmul.mubr.msk.f32.gmra.mxu1 %vm90_vm0, %v2998_v39  ;;  %468 = vmatprep.subr.mxu1 %v3000_v40 }
  0x3c   :  { %469 = vmatpush1.msra.mxu1 %v3003_v41  ;;  %334 = vmatprep.mubr.f32.mxu1 %v3897_v0 }
  0x3d   :  { %470 = vmatprep.subr.mxu1 %v3007_v42  ;;  %689 = vmatpush1.msra.mxu0 %v2876_v9 }
  0x3e   :  { %471 = vmatpush1.msra.mxu1 %v3013_v43  ;;  %690 = vmatprep.subr.mxu0 %v2885_v11 }
  0x3f   :  { %2500 = vmatmul.mubr.msk.f32.gmra.mxu1 %vm90_vm0, %v3020_v44  ;;  %472 = vmatprep.subr.mxu1 %v3022_v45 }
  0x40   :  { %473 = vmatpush1.msra.mxu1 %v3025_v46  ;;  %508 = vmatprep.mubr.f32.mxu1 %v3897_v0 }
  0x41   :  { %474 = vmatprep.subr.mxu1 %v3029_v47  ;;  %691 = vmatpush1.msra.mxu0 %v2888_v12 }
  0x42   :  { %475 = vmatpush1.msra.mxu1 %v3036_v48  ;;  %191 = vmatprep.mubr.f32.mxu0 %v3897_v0 }
  0x43   :  { %509 = vmatmul.mubr.f32.vlgmr.msra.gmra.mxu1 %v3897_v0  ;;  %515 = vmatprep.subr.mxu1 %v3040_v49 }
  0x44   :  { %516 = vmatpush1.msra.mxu1 %v3043_v50  ;;  %579 = vmatprep.mubr.f32.mxu1 %v3897_v0 }
  0x45   :  { %517 = vmatprep.subr.mxu1 %v3047_v51  ;;  %692 = vmatprep.subr.mxu0 %v2891_v13 }
  0x46   :  { %518 = vmatpush1.msra.mxu1 %v3052_v52  ;;  %2487 = vmatmul.mubr.msk.f32.gmra.mxu0 %vm90_vm0, %v2903_v15  ;;  %v3126_v15 = vld [vmem:[#allocation4 + $0xb0] sm:$0xff] }
  0x47   :  { %519 = vmatprep.subr.mxu1 %v3055_v53  ;;  %693 = vmatpush1.msra.mxu0 %v2896_v14 }
  0x48   :  { %520 = vmatpush1.msra.mxu1 %v3059_v54  ;;  %694 = vmatprep.subr.mxu0 %v2905_v16 }
  0x49   :  { %521 = vmatprep.subr.mxu1 %v3063_v55  ;;  %695 = vmatpush1.msra.mxu0 %v2908_v17 }
  0x4a   :  { %522 = vmatpush1.msra.mxu1 %v3067_v56  ;;  %197 = vmatprep.mubr.f32.mxu0 %v3897_v0 }
  0x4b   :  { %523 = vmatprep.subr.mxu1 %v3071_v57  ;;  %696 = vmatprep.subr.mxu0 %v2911_v18 }
  0x4c   :  { %524 = vmatpush1.msra.mxu1 %v3076_v58  ;;  %2488 = vmatmul.mubr.msk.f32.gmra.mxu0 %vm90_vm0, %v2929_v22  ;;  %v3138_v22 = vld [vmem:[#allocation4 + $0x78] sm:$0xff] }
  0x4d   :  { %525 = vmatprep.subr.mxu1 %v3080_v59  ;;  %697 = vmatpush1.msra.mxu0 %v2919_v20  ;;  %3984 = vst [vmem:[#allocation26_spill] sm:$0xff] %v3138_v22 }
  0x4e   :  { %526 = vmatpush1.msra.mxu1 %v3084_v60  ;;  %698 = vmatprep.subr.mxu0 %v2931_v23 }
  0x4f   :  { %527 = vmatprep.subr.mxu1 %v3088_v61  ;;  %699 = vmatpush1.msra.mxu0 %v2934_v24 }
  0x50   :  { %528 = vmatpush1.msra.mxu1 %v3092_v62  ;;  %203 = vmatprep.mubr.f32.mxu0 %v3897_v0 }
  0x51   :  { %529 = vmatprep.subr.mxu1 %v3096_v63  ;;  %700 = vmatprep.subr.mxu0 %v2937_v25 }
  0x52   :  { %530 = vmatpush1.msra.mxu1 %v3101_v1  ;;  %2489 = vmatmul.mubr.msk.f32.gmra.mxu0 %vm90_vm0, %v2955_v29  ;;  %v3151_v29 = vld [vmem:[#allocation4 + $0x50] sm:$0xff] }
  0x53   :  { %531 = vmatprep.subr.mxu1 %v3105_v2  ;;  %701 = vmatpush1.msra.mxu0 %v2945_v27  ;;  %3987 = vst [vmem:[#allocation29_spill] sm:$0xff] %v3151_v29 }
  0x54   :  { %532 = vmatpush1.msra.mxu1 %v3109_v3  ;;  %702 = vmatprep.subr.mxu0 %v2957_v30 }
  0x55   :  { %533 = vmatprep.subr.mxu1 %v3113_v4  ;;  %703 = vmatpush1.msra.mxu0 %v2960_v31  ;;  %v3991_v31 = vmov 0.0  }
  0x56   :  { %534 = vmatpush1.msra.mxu1 %v3117_v5  ;;  %209 = vmatprep.mubr.f32.mxu0 %v3897_v0  ;;  %v3155_v0 = vld [vmem:[#allocation4 + $0x38] sm:$0xff] }
  0x57   :  { %535 = vmatprep.subr.mxu1 %v3121_v10  ;;  %704 = vmatprep.subr.mxu0 %v2963_v32  ;;  %3988 = vst [vmem:[#allocation30_spill] sm:$0xff] %v3155_v0  ;;  %v3159_v32 = vld [vmem:[#allocation4 + $0x30] sm:$0xff] }
  0x58   :  { %536 = vmatpush1.msra.mxu1 %v3126_v15  ;;  %2490 = vmatmul.mubr.msk.f32.gmra.mxu0 %vm90_vm0, %v2975_v34  ;;  %3989 = vst [vmem:[#allocation31_spill] sm:$0xff] %v3159_v32  ;;  %v3163_v34 = vld [vmem:[#allocation4 + $0x18] sm:$0xff] }
  0x59   :  { %537 = vmatprep.subr.mxu1 %v3130_v19  ;;  %705 = vmatpush1.msra.mxu0 %v2968_v33  ;;  %3990 = vst [vmem:[#allocation32_spill] sm:$0xff] %v3163_v34  ;;  %v3167_v33 = vld [vmem:[#allocation4 + $0x10] sm:$0xff] }
  0x5a   :  { %538 = vmatpush1.msra.mxu1 %v3134_v21  ;;  %706 = vmatprep.subr.mxu0 %v2977_v35  ;;  %3992 = vst [vmem:[#allocation33_spill] sm:$0xff] %v3167_v33 }
  0x5b   :  { %539 = vmatprep.subr.mxu1 %v3138_v22  ;;  %707 = vmatpush1.msra.mxu0 %v2980_v36 }
  0x5c   :  { %540 = vmatpush1.msra.mxu1 %v3142_v26  ;;  %215 = vmatprep.mubr.f32.mxu0 %v3991_v31 }
  0x5d   :  { %541 = vmatprep.subr.mxu1 %v3146_v28  ;;  %708 = vmatprep.subr.mxu0 %v2985_v37 }
  0x5e   :  { %542 = vmatpush1.msra.mxu1 %v3151_v29  ;;  %2491 = vmatmul.mubr.msk.f32.gmra.mxu0 %vm90_vm0, %v2998_v39 }
  0x5f   :  { %543 = vmatprep.subr.mxu1 %v3155_v0  ;;  %709 = vmatpush1.msra.mxu0 %v2991_v38 }
  0x60   :  { %544 = vmatpush1.msra.mxu1 %v3159_v32  ;;  %710 = vmatprep.subr.mxu0 %v3000_v40 }
  0x61   :  { %545 = vmatprep.subr.mxu1 %v3163_v34  ;;  %711 = vmatpush1.msra.mxu0 %v3003_v41 }
  0x62   :  { %546 = vmatpush1.msra.mxu1 %v3167_v33  ;;  %221 = vmatprep.mubr.f32.mxu0 %v3991_v31 }
  0x63   :  { %580 = vmatmul.mubr.f32.vlgmr.msra.gmra.mxu1 %v3991_v31  ;;  %757 = vmatprep.subr.mxu1 %v3040_v49 }
  0x64   :  { %758 = vmatpush1.msra.mxu1 %v3043_v50  ;;  %712 = vmatprep.subr.mxu0 %v3007_v42 }
  0x65   :  { %759 = vmatprep.subr.mxu1 %v3047_v51  ;;  %2492 = vmatmul.mubr.msk.f32.gmra.mxu0 %vm90_vm0, %v3020_v44 }
  0x66   :  { %760 = vmatpush1.msra.mxu1 %v3052_v52  ;;  %713 = vmatpush1.msra.mxu0 %v3013_v43 }
  0x67   :  { %761 = vmatprep.subr.mxu1 %v3055_v53  ;;  %714 = vmatprep.subr.mxu0 %v3022_v45 }
  0x68   :  { %762 = vmatpush1.msra.mxu1 %v3059_v54  ;;  %715 = vmatpush1.msra.mxu0 %v3025_v46 }
  0x69   :  { %763 = vmatprep.subr.mxu1 %v3063_v55  ;;  %716 = vmatprep.subr.mxu0 %v3029_v47 }
  0x6a   :  { %764 = vmatpush1.msra.mxu1 %v3067_v56  ;;  %717 = vmatpush1.msra.mxu0 %v3036_v48 }
  0x6b   :  { %765 = vmatprep.subr.mxu1 %v3071_v57  ;;  %750 = vmatprep.mubr.f32.mxu0 %v3991_v31 }
  0x6c   :  { %766 = vmatpush1.msra.mxu1 %v3076_v58  ;;  %821 = vmatprep.mubr.f32.mxu1 %v3991_v31  ;;  %v68_v31 = vld [vmem:[%s3893_s3] sm:$0xf] }
  0x6d   :  { %767 = vmatprep.subr.mxu1 %v3080_v59  ;;  %929 = vmatprep.subr.mxu0 %v2867_v6  ;;  %v70_v6 = vlaneseq }
  0x6e   :  { %768 = vmatpush1.msra.mxu1 %v3084_v60 }
  0x6f   :  { %769 = vmatprep.subr.mxu1 %v3088_v61  ;;  %v71_v39 = vshrl.u32 %v70_v6, 7 }
  0x70   :  { %770 = vmatpush1.msra.mxu1 %v3092_v62 }
  0x71   :  { %771 = vmatprep.subr.mxu1 %v3096_v63  ;;  %v80_v44 = vsub.s32 2, %v71_v39  ;;  %v84_v47 = vsub.s32 3, %v71_v39 }
  0x72   :  { %772 = vmatpush1.msra.mxu1 %v3101_v1 }
  0x73   :  { %773 = vmatprep.subr.mxu1 %v3105_v2 }
  0x74   :  { %774 = vmatpush1.msra.mxu1 %v3109_v3 }
  0x75   :  { %775 = vmatprep.subr.mxu1 %v3113_v4 }
  0x76   :  { %776 = vmatpush1.msra.mxu1 %v3117_v5 }
  0x77   :  { %777 = vmatprep.subr.mxu1 %v3121_v10 }
  0x78   :  { %778 = vmatpush1.msra.mxu1 %v3126_v15 }
  0x79   :  { %779 = vmatprep.subr.mxu1 %v3130_v19 }
  0x7a   :  { %780 = vmatpush1.msra.mxu1 %v3134_v21 }
  0x7b   :  { %781 = vmatprep.subr.mxu1 %v3138_v22 }
  0x7c   :  { %782 = vmatpush1.msra.mxu1 %v3142_v26 }
  0x7d   :  { %783 = vmatprep.subr.mxu1 %v3146_v28 }
  0x7e   :  { %784 = vmatpush1.msra.mxu1 %v3151_v29 }
  0x7f   :  { %785 = vmatprep.subr.mxu1 %v3155_v0  ;;  %v3231_v0 = vrot.slane %v68_v31, %v80_v44 }
  0x80   :  { %786 = vmatpush1.msra.mxu1 %v3159_v32 }
  0x81   :  { %787 = vmatprep.subr.mxu1 %v3163_v34  ;;  %v3233_v34 = vrot.slane %v68_v31, %v84_v47 }
  0x82   :  { %788 = vmatpush1.msra.mxu1 %v3167_v33 }
  0x83   :  { %1000 = vmatprep.subr.mxu1 %v3040_v49 }
  0xe3   :  { %v3227_v48 = vpop.f32.mrf.mxu1 }
  0xe5   :  { %v3229_v46 = vpop.f32.mrf.mxu1 }
  0xe7   :  { %v300_v32 = vpop.f32.mrf.mxu1 }
  0xe8   :  { %v3236_v33 = vadd.f32 %v300_v32, %v3231_v0 }
  0xe9   :  { %v302_v49 = vpop.f32.mrf.mxu1 }
  0xea   :  { %3993 = vst [vmem:[#allocation34_spill] sm:$0xff] %v3236_v33  ;;  %v3239_v6 = vadd.f32 %v302_v49, %v3233_v34 }
  0xeb   :  { %v306_v45 = vpop.f32.mrf.mxu1 }
  0xec   :  { %3994 = vst [vmem:[#allocation35_spill] sm:$0xff] %v3239_v6  ;;  %v3242_v29 = vadd.f32 %v306_v45, %v3231_v0 }
  0xed   :  { %v308_v43 = vpop.f32.mrf.mxu1 }
  0xee   :  { %3995 = vst [vmem:[#allocation36_spill] sm:$0xff] %v3242_v29  ;;  %v3245_v28 = vadd.f32 %v308_v43, %v3233_v34 }
  0xef   :  { %v312_v44 = vpop.f32.mrf.mxu1 }
  0xf0   :  { %3996 = vst [vmem:[#allocation37_spill] sm:$0xff] %v3245_v28  ;;  %v3248_v42 = vadd.f32 %v312_v44, %v3231_v0 }
  0xf1   :  { %v314_v47 = vpop.f32.mrf.mxu1 }
  0xf2   :  { %3997 = vst [vmem:[#allocation38_spill] sm:$0xff] %v3248_v42  ;;  %v3251_v32 = vadd.f32 %v314_v47, %v3233_v34  ;;  %v181_v42 = vpop.f32.mrf.mxu0 }
  0xf3   :  { %v318_v33 = vpop.f32.mrf.mxu1 }
  0xf4   :  { %3998 = vst [vmem:[#allocation39_spill] sm:$0xff] %v3251_v32  ;;  %v3254_v49 = vadd.f32 %v318_v33, %v3231_v0  ;;  %v76_v32 = vsub.s32 1, %v71_v39 }
  0xf5   :  { %v320_v6 = vpop.f32.mrf.mxu1 }
  0xf6   :  { %3999 = vst [vmem:[#allocation40_spill] sm:$0xff] %v3254_v49  ;;  %v3257_v45 = vadd.f32 %v320_v6, %v3233_v34  ;;  %v72_v49 = vsub.s32 0, %v71_v39  ;;  %v183_v6 = vpop.f32.mrf.mxu0 }
  0xf7   :  { %v324_v29 = vpop.f32.mrf.mxu1 }
  0xf8   :  { %4000 = vst [vmem:[#allocation41_spill] sm:$0xff] %v3257_v45  ;;  %v3260_v43 = vadd.f32 %v324_v29, %v3231_v0 }
  0xf9   :  { %v326_v28 = vpop.f32.mrf.mxu1 }
  0xfa   :  { %4001 = vst [vmem:[#allocation42_spill] sm:$0xff] %v3260_v43  ;;  %v3263_v44 = vadd.f32 %v326_v28, %v3233_v34  ;;  %v3274_v43 = vrot.slane %v68_v31, %v76_v32  ;;  %v3276_v28 = vpop.f32.mrf.mxu0 }
  0xfb   :  { %v330_v26 = vpop.f32.mrf.mxu1  ;;  %4007 = vst [vmem:[#allocation48_spill] sm:$0xff] %v3276_v28 }
  0xfc   :  { %4002 = vst [vmem:[#allocation43_spill] sm:$0xff] %v3263_v44  ;;  %v3266_v47 = vadd.f32 %v330_v26, %v3231_v0  ;;  %4006 = vst [vmem:[#allocation47_spill] sm:$0xff] %v3274_v43  ;;  %v3278_v44 = vrot.slane %v68_v31, %v72_v49  ;;  %v184_v39 = vadd.f32 %v183_v6, %v3274_v43 }
  0xfd   :  { %v332_v33 = vpop.f32.mrf.mxu1 }
  0xfe   :  { %4003 = vst [vmem:[#allocation44_spill] sm:$0xff] %v3266_v47  ;;  %v3269_v41 = vadd.f32 %v332_v33, %v3233_v34  ;;  %v3284_v33 = vpop.f32.mrf.mxu0 }
  0xff   :  { %v336_v45 = vpop.f32.mrf.mxu1  ;;  %4009 = vst [vmem:[#allocation50_spill] sm:$0xff] %v3284_v33 }
 0x100   :  { %4004 = vst [vmem:[#allocation45_spill] sm:$0xff] %v3269_v41  ;;  %v3272_v29 = vadd.f32 %v336_v45, %v3231_v0  ;;  %v182_v41 = vadd.f32 %v181_v42, %v3278_v44 }
 0x101   :  { %v338_v22 = vpop.f32.mrf.mxu1 }
 0x102   :  { %4005 = vst [vmem:[#allocation46_spill] sm:$0xff] %v3272_v29  ;;  %v3281_v26 = vadd.f32 %v338_v22, %v3233_v34 }
 0x103   :  { %v510_v47 = vpop.f32.mrf.mxu1 }
 0x104   :  { %4008 = vst [vmem:[#allocation49_spill] sm:$0xff] %v3281_v26  ;;  %v586_v32 = vadd.f32 %v510_v47, %v182_v41 }
 0x105   :  { %v512_v40 = vpop.f32.mrf.mxu1 }
 0x106   :  { %v587_v45 = vadd.f32 %v512_v40, %v184_v39  ;;  %v193_v29 = vpop.f32.mrf.mxu0  ;;  %v2501_v26 = vmul.f32 -1.442695, %v586_v32 }
 0x107   :  { %v3288_v21 = vadd.f32 %v193_v29, %v3278_v44 }
 0x108   :  { %v195_v31 = vpop.f32.mrf.mxu0  ;;  %v2502_v22 = vmul.f32 -1.442695, %v587_v45 }
 0x109   :  { %v3291_v49 = vadd.f32 %v195_v31, %v3274_v43 }
 0x10a   :  { %2602 = vpow2.f32 %v2502_v22 }
 0x10b   :  { %4010 = vst [vmem:[#allocation51_spill] sm:$0xff] %v3291_v49  ;;  %2604 = vpow2.f32 %v2501_v26 }
 0x10c   :  { %v199_v28 = vpop.f32.mrf.mxu0 }
 0x10d   :  { %v3294_v6 = vadd.f32 %v199_v28, %v3278_v44 }
 0x10e   :  { %v201_v33 = vpop.f32.mrf.mxu0 }
 0x10f   :  { %4011 = vst [vmem:[#allocation52_spill] sm:$0xff] %v3294_v6  ;;  %v3297_v40 = vadd.f32 %v201_v33, %v3274_v43 }
 0x111   :  { %4012 = vst [vmem:[#allocation53_spill] sm:$0xff] %v3297_v40 }
 0x112   :  { %v205_v41 = vpop.f32.mrf.mxu0 }
 0x113   :  { %v3300_v42 = vadd.f32 %v205_v41, %v3278_v44 }
 0x114   :  { %v207_v47 = vpop.f32.mrf.mxu0 }
 0x115   :  { %4013 = vst [vmem:[#allocation54_spill] sm:$0xff] %v3300_v42  ;;  %v3303_v29 = vadd.f32 %v207_v47, %v3274_v43  ;;  %v295_v47 = vadd.f32 %v3227_v48, %v3231_v0 }
 0x117   :  { %4014 = vst [vmem:[#allocation55_spill] sm:$0xff] %v3303_v29  ;;  %v2603_v32 = vpop.eup %2602 }
 0x118   :  { %v211_v39 = vpop.f32.mrf.mxu0  ;;  %v2605_v26 = vpop.eup %2604  ;;  %v599_v33 = vadd.f32 1.0, %v2603_v32 }
 0x119   :  { %v3306_v45 = vadd.f32 %v211_v39, %v3278_v44  ;;  %v593_v40 = vadd.f32 1.0, %v2605_v26 }
 0x11a   :  { %v213_v28 = vpop.f32.mrf.mxu0  ;;  %2606 = vrcp.f32 %v599_v33  ;;  %v4047_v33 = vld [vmem:[#allocation34_spill] sm:$0xff] }
 0x11b   :  { %4015 = vst [vmem:[#allocation56_spill] sm:$0xff] %v3306_v45  ;;  %v3309_v31 = vadd.f32 %v213_v28, %v3274_v43  ;;  %v297_v45 = vadd.f32 %v3229_v46, %v3233_v34  ;;  %2608 = vrcp.f32 %v593_v40 }
 0x11d   :  { %4016 = vst [vmem:[#allocation57_spill] sm:$0xff] %v3309_v31 }
 0x11e   :  { %v217_v22 = vpop.f32.mrf.mxu0 }
 0x11f   :  { %v3312_v41 = vadd.f32 %v217_v22, %v3278_v44 }
 0x120   :  { %v219_v29 = vpop.f32.mrf.mxu0 }
 0x121   :  { %4017 = vst [vmem:[#allocation58_spill] sm:$0xff] %v3312_v41  ;;  %v3317_v39 = vadd.f32 %v219_v29, %v3274_v43 }
 0x123   :  { %v581_v42 = vpop.f32.mrf.mxu1  ;;  %4018 = vst [vmem:[#allocation59_spill] sm:$0xff] %v3317_v39 }
 0x124   :  { %v588_v28 = vadd.f32 %v581_v42, %v295_v47 }
 0x125   :  { %v583_v32 = vpop.f32.mrf.mxu1  ;;  %v223_v31 = vpop.f32.mrf.mxu0 }
 0x126   :  { %2610 = vtanh.f32 %v588_v28  ;;  %v589_v26 = vadd.f32 %v583_v32, %v297_v45  ;;  %v3322_v41 = vadd.f32 %v223_v31, %v3278_v44 }
 0x127   :  { %v2607_v0 = vpop.eup %2606 }
 0x128   :  { %v2503_v22 = vmul.f32 -1.442695, %v589_v26  ;;  %4019 = vst [vmem:[#allocation60_spill] sm:$0xff] %v3322_v41  ;;  %v2609_v48 = vpop.eup %2608  ;;  %v609_v29 = vmul.f32 0.0, %v2607_v0 }
 0x12a   :  { %2612 = vpow2.f32 %v2503_v22 }
 0x133   :  { %v2611_v6 = vpop.eup %2610 }
 0x134   :  { %v610_v39 = vmul.f32 %v2611_v6, %v2609_v48  ;;  %v4046_v6 = vld [vmem:[#allocation35_spill] sm:$0xff] }
 0x136   :  { %v3324_v49 = vadd.f32 %v610_v39, %v609_v29 }
 0x137   :  { %v2613_v46 = vpop.eup %2612 }
 0x138   :  { %v606_v34 = vadd.f32 1.0, %v2613_v46  ;;  %2614 = vtanh.f32 %v3324_v49 }
 0x13a   :  { %2616 = vrcp.f32 %v606_v34 }
 0x145   :  { %v2615_v40 = vpop.eup %2614 }
 0x147   :  { %v2617_v42 = vpop.eup %2616 }
 0x148   :  { %v3327_v45 = vmul.f32 %v2617_v42, %v2615_v40 }
 0x14a   :  { %4020 = vst [vmem:[#allocation61_spill] sm:$0xff] %v3327_v45  ;;  %751 = vmatmul.mubr.f32.vlgmr.msra.gmra.mxu0 %v3327_v45  ;;  %822 = vmatmul.mubr.f32.vlgmr.msra.gmra.mxu1 %v3327_v45  ;;  %v4070_v45 = vld [vmem:[#allocation51_spill] sm:$0xff] }
 0x14b   :  { %930 = vmatpush1.msra.mxu0 %v2869_v7  ;;  %1001 = vmatpush1.msra.mxu1 %v3043_v50  ;;  %v4021_v7 = vld [vmem:[#allocation13_spill] sm:$0xff] }
 0x14c   :  { %931 = vmatprep.subr.mxu0 %v2871_v8  ;;  %1002 = vmatprep.subr.mxu1 %v3047_v51  ;;  %v4022_v8 = vld [vmem:[#allocation14_spill] sm:$0xff] }
 0x14d   :  { %932 = vmatpush1.msra.mxu0 %v2876_v9  ;;  %1003 = vmatpush1.msra.mxu1 %v3052_v52  ;;  %v4023_v9 = vld [vmem:[#allocation15_spill] sm:$0xff] }
 0x14e   :  { %933 = vmatprep.subr.mxu0 %v2885_v11  ;;  %1004 = vmatprep.subr.mxu1 %v3055_v53  ;;  %v4024_v11 = vld [vmem:[#allocation25_spill] sm:$0xff] }
 0x14f   :  { %934 = vmatpush1.msra.mxu0 %v2888_v12  ;;  %1005 = vmatpush1.msra.mxu1 %v3059_v54  ;;  %v4025_v12 = vld [vmem:[#allocation16_spill] sm:$0xff] }
 0x150   :  { %935 = vmatprep.subr.mxu0 %v2891_v13  ;;  %1006 = vmatprep.subr.mxu1 %v3063_v55  ;;  %v4026_v13 = vld [vmem:[#allocation26_spill] sm:$0xff] }
 0x151   :  { %936 = vmatpush1.msra.mxu0 %v2896_v14  ;;  %1007 = vmatpush1.msra.mxu1 %v3067_v56  ;;  %v4027_v14 = vld [vmem:[#allocation17_spill] sm:$0xff] }
 0x152   :  { %937 = vmatprep.subr.mxu0 %v2905_v16  ;;  %1008 = vmatprep.subr.mxu1 %v3071_v57  ;;  %v4028_v16 = vld [vmem:[#allocation27_spill] sm:$0xff]  ;;  %v4041_v57 = vld [vmem:[#allocation33_spill] sm:$0xff] }
 0x153   :  { %938 = vmatpush1.msra.mxu0 %v2908_v17  ;;  %1009 = vmatpush1.msra.mxu1 %v3076_v58  ;;  %v4029_v17 = vld [vmem:[#allocation18_spill] sm:$0xff]  ;;  %v4042_v58 = vld [vmem:[#allocation24_spill] sm:$0xff] }
 0x154   :  { %939 = vmatprep.subr.mxu0 %v2911_v18  ;;  %1010 = vmatprep.subr.mxu1 %v3080_v59  ;;  %v4030_v18 = vld [vmem:[#allocation28_spill] sm:$0xff]  ;;  %v3396_v59 = vpop.f32.mrf.mxu0 }
 0x155   :  { %940 = vmatpush1.msra.mxu0 %v2919_v20  ;;  %1011 = vmatpush1.msra.mxu1 %v3084_v60  ;;  %v4031_v20 = vld [vmem:[#allocation19_spill] sm:$0xff]  ;;  %4043 = vst [vmem:[#allocation13_spill] sm:$0xff] %v3396_v59  ;;  %v4044_v60 = vld [vmem:[#allocation48_spill] sm:$0xff] }
 0x156   :  { %941 = vmatprep.subr.mxu0 %v2931_v23  ;;  %1012 = vmatprep.subr.mxu1 %v3088_v61  ;;  %v4032_v23 = vld [vmem:[#allocation29_spill] sm:$0xff]  ;;  %v188_v61 = vadd.f32 %v4044_v60, %v3278_v44 }
 0x157   :  { %942 = vmatpush1.msra.mxu0 %v2934_v24  ;;  %1013 = vmatpush1.msra.mxu1 %v3092_v62  ;;  %v4033_v24 = vld [vmem:[#allocation20_spill] sm:$0xff]  ;;  %v3497_v60 = vld [vmem:[#allocation4 + $0xe0] sm:$0xff] }
 0x158   :  { %943 = vmatprep.subr.mxu0 %v2937_v25  ;;  %1014 = vmatprep.subr.mxu1 %v3096_v63  ;;  %v4034_v25 = vld [vmem:[#allocation30_spill] sm:$0xff] }
 0x159   :  { %944 = vmatpush1.msra.mxu0 %v2945_v27  ;;  %1015 = vmatpush1.msra.mxu1 %v3101_v1  ;;  %v4035_v27 = vld [vmem:[#allocation21_spill] sm:$0xff]  ;;  %v4045_v63 = vld [vmem:[#allocation50_spill] sm:$0xff] }
 0x15a   :  { %945 = vmatprep.subr.mxu0 %v2957_v30  ;;  %1016 = vmatprep.subr.mxu1 %v3105_v2  ;;  %v4036_v30 = vld [vmem:[#allocation31_spill] sm:$0xff]  ;;  %v190_v1 = vadd.f32 %v4045_v63, %v3274_v43  ;;  %v3505_v63 = vld [vmem:[#allocation4 + $0xd8] sm:$0xff] }
 0x15b   :  { %946 = vmatpush1.msra.mxu0 %v4021_v7  ;;  %1017 = vmatpush1.msra.mxu1 %v3109_v3 }
 0x15c   :  { %947 = vmatprep.subr.mxu0 %v4022_v8  ;;  %1018 = vmatprep.subr.mxu1 %v3113_v4 }
 0x15d   :  { %948 = vmatpush1.msra.mxu0 %v4023_v9  ;;  %1019 = vmatpush1.msra.mxu1 %v3117_v5 }
 0x15e   :  { %949 = vmatprep.subr.mxu0 %v2977_v35  ;;  %1020 = vmatprep.subr.mxu1 %v3121_v10  ;;  %v4037_v35 = vld [vmem:[#allocation22_spill] sm:$0xff] }
 0x15f   :  { %950 = vmatpush1.msra.mxu0 %v2980_v36  ;;  %1021 = vmatpush1.msra.mxu1 %v3126_v15  ;;  %v4038_v36 = vld [vmem:[#allocation32_spill] sm:$0xff] }
 0x160   :  { %951 = vmatprep.subr.mxu0 %v2985_v37  ;;  %1022 = vmatprep.subr.mxu1 %v3130_v19  ;;  %v4039_v37 = vld [vmem:[#allocation23_spill] sm:$0xff] }
 0x161   :  { %952 = vmatpush1.msra.mxu0 %v2991_v38  ;;  %1023 = vmatpush1.msra.mxu1 %v4024_v11  ;;  %v4040_v38 = vmov 0.0   ;;  %v3445_v11 = vld [vmem:[#allocation4 + $0x168] sm:$0xff] }
 0x162   :  { %953 = vmatprep.subr.mxu0 %v4025_v12  ;;  %1024 = vmatprep.subr.mxu1 %v4026_v13  ;;  %v3447_v12 = vld [vmem:[#allocation4 + $0x178] sm:$0xff]  ;;  %v3451_v13 = vld [vmem:[#allocation4 + $0x160] sm:$0xff] }
 0x163   :  { %954 = vmatpush1.msra.mxu0 %v4027_v14  ;;  %1025 = vmatpush1.msra.mxu1 %v4028_v16  ;;  %v3453_v14 = vld [vmem:[#allocation4 + $0x170] sm:$0xff]  ;;  %v3457_v16 = vld [vmem:[#allocation4 + $0x148] sm:$0xff] }
 0x164   :  { %955 = vmatprep.subr.mxu0 %v4029_v17  ;;  %1026 = vmatprep.subr.mxu1 %v4030_v18  ;;  %v3459_v17 = vld [vmem:[#allocation4 + $0x158] sm:$0xff]  ;;  %v3463_v18 = vld [vmem:[#allocation4 + $0x140] sm:$0xff] }
 0x165   :  { %956 = vmatpush1.msra.mxu0 %v4031_v20  ;;  %1027 = vmatpush1.msra.mxu1 %v4032_v23  ;;  %v3465_v20 = vld [vmem:[#allocation4 + $0x150] sm:$0xff]  ;;  %v3469_v23 = vld [vmem:[#allocation4 + $0x128] sm:$0xff] }
 0x166   :  { %957 = vmatprep.subr.mxu0 %v4033_v24  ;;  %1028 = vmatprep.subr.mxu1 %v4034_v25  ;;  %v3471_v24 = vld [vmem:[#allocation4 + $0x138] sm:$0xff]  ;;  %v3475_v25 = vld [vmem:[#allocation4 + $0x120] sm:$0xff] }
 0x167   :  { %958 = vmatpush1.msra.mxu0 %v4035_v27  ;;  %1029 = vmatpush1.msra.mxu1 %v4036_v30  ;;  %v3477_v27 = vld [vmem:[#allocation4 + $0x130] sm:$0xff]  ;;  %v3481_v30 = vld [vmem:[#allocation4 + $0x108] sm:$0xff] }
 0x168   :  { %959 = vmatprep.subr.mxu0 %v4037_v35  ;;  %1030 = vmatprep.subr.mxu1 %v4038_v36  ;;  %v3483_v35 = vld [vmem:[#allocation4 + $0x118] sm:$0xff]  ;;  %v3485_v36 = vld [vmem:[#allocation4 + $0x100] sm:$0xff] }
 0x169   :  { %960 = vmatpush1.msra.mxu0 %v4039_v37  ;;  %993 = vmatprep.mubr.f32.mxu0 %v4040_v38  ;;  %v3489_v37 = vld [vmem:[#allocation4 + $0x110] sm:$0xff] }
 0x16a   :  { %1031 = vmatpush1.msra.mxu1 %v4041_v57  ;;  %1064 = vmatprep.mubr.f32.mxu1 %v4040_v38  ;;  %v3491_v57 = vld [vmem:[#allocation4 + $0xe8] sm:$0xff] }
 0x16b   :  { %1243 = vmatprep.subr.mxu1 %v4042_v58  ;;  %v3493_v58 = vld [vmem:[#allocation4 + $0xf8] sm:$0xff] }
 0x20a   :  { %v752_v62 = vpop.f32.mrf.mxu0  ;;  %v823_v10 = vpop.f32.mrf.mxu1 }
 0x20b   :  { %v828_v2 = vadd.f32 %v752_v62, %v188_v61  ;;  %v830_v47 = vadd.f32 %v823_v10, %v4047_v33  ;;  %v3499_v61 = vld [vmem:[#allocation4 + $0xf0] sm:$0xff]  ;;  %v3501_v62 = vld [vmem:[#allocation4 + $0xc8] sm:$0xff] }
 0x20c   :  { %v754_v3 = vpop.f32.mrf.mxu0  ;;  %v825_v19 = vpop.f32.mrf.mxu1  ;;  %v3521_v10 = vld [vmem:[#allocation4 + $0xb0] sm:$0xff]  ;;  %v3537_v33 = vld [vmem:[#allocation4 + $0x68] sm:$0xff] }
 0x20d   :  { %v2504_v4 = vmul.f32 -1.442695, %v828_v2  ;;  %v829_v5 = vadd.f32 %v754_v3, %v190_v1  ;;  %v831_v31 = vadd.f32 %v825_v19, %v4046_v6  ;;  %v3507_v1 = vld [vmem:[#allocation4 + $0xc0] sm:$0xff]  ;;  %v3509_v2 = vld [vmem:[#allocation4 + $0xd0] sm:$0xff]  ;;  %v3513_v3 = vld [vmem:[#allocation4 + $0xa8] sm:$0xff]  ;;  %4051 = vst [vmem:[#allocation16_spill] sm:$0xff] %v3521_v10 }
 0x20e   :  { %v3527_v19 = vld [vmem:[#allocation4 + $0x98] sm:$0xff]  ;;  %v3531_v6 = vld [vmem:[#allocation4 + $0x80] sm:$0xff]  ;;  %4054 = vst [vmem:[#allocation27_spill] sm:$0xff] %v3537_v33 }
 0x20f   :  { %2618 = vpow2.f32 %v2504_v4  ;;  %v2505_v15 = vmul.f32 -1.442695, %v829_v5  ;;  %v2506_v39 = vmul.f32 -1.442695, %v831_v31  ;;  %v3515_v4 = vld [vmem:[#allocation4 + $0xb8] sm:$0xff]  ;;  %v3519_v5 = vld [vmem:[#allocation4 + $0xa0] sm:$0xff] }
 0x210   :  { %4050 = vst [vmem:[#allocation25_spill] sm:$0xff] %v3515_v4  ;;  %4052 = vst [vmem:[#allocation26_spill] sm:$0xff] %v3527_v19  ;;  %v3533_v31 = vld [vmem:[#allocation4 + $0x90] sm:$0xff] }
 0x211   :  { %2620 = vpow2.f32 %v2505_v15  ;;  %v3525_v15 = vld [vmem:[#allocation4 + $0x88] sm:$0xff]  ;;  %4053 = vst [vmem:[#allocation17_spill] sm:$0xff] %v3533_v31 }
 0x212   :  { %2622 = vtanh.f32 %v830_v47  ;;  %v3539_v47 = vld [vmem:[#allocation4 + $0x78] sm:$0xff] }
 0x213   :  { %2624 = vpow2.f32 %v2506_v39  ;;  %4055 = vst [vmem:[#allocation18_spill] sm:$0xff] %v3539_v47  ;;  %v3543_v39 = vld [vmem:[#allocation4 + $0x60] sm:$0xff] }
 0x214   :  { %4056 = vst [vmem:[#allocation28_spill] sm:$0xff] %v3543_v39 }
 0x21c   :  { %v2619_v28 = vpop.eup %2618 }
 0x21d   :  { %v835_v44 = vadd.f32 1.0, %v2619_v28  ;;  %v3545_v28 = vld [vmem:[#allocation4 + $0x70] sm:$0xff] }
 0x21e   :  { %v2621_v32 = vpop.eup %2620  ;;  %4057 = vst [vmem:[#allocation19_spill] sm:$0xff] %v3545_v28 }
 0x21f   :  { %2626 = vrcp.f32 %v835_v44  ;;  %v841_v26 = vadd.f32 1.0, %v2621_v32  ;;  %v2623_v22 = vpop.eup %2622  ;;  %v3549_v44 = vld [vmem:[#allocation4 + $0x48] sm:$0xff]  ;;  %v3551_v32 = vld [vmem:[#allocation4 + $0x58] sm:$0xff] }
 0x220   :  { %v2625_v0 = vpop.eup %2624  ;;  %4058 = vst [vmem:[#allocation29_spill] sm:$0xff] %v3549_v44  ;;  %4059 = vst [vmem:[#allocation20_spill] sm:$0xff] %v3551_v32 }
 0x221   :  { %2628 = vrcp.f32 %v841_v26  ;;  %v848_v34 = vadd.f32 1.0, %v2625_v0  ;;  %v3555_v26 = vld [vmem:[#allocation4 + $0x40] sm:$0xff]  ;;  %v3561_v0 = vld [vmem:[#allocation4 + $0x28] sm:$0xff] }
 0x222   :  { %4060 = vst [vmem:[#allocation30_spill] sm:$0xff] %v3555_v26  ;;  %4062 = vst [vmem:[#allocation31_spill] sm:$0xff] %v3561_v0 }
 0x223   :  { %2630 = vrcp.f32 %v848_v34  ;;  %v3573_v34 = vld [vmem:[#allocation4 + $0x8] sm:$0xff] }
 0x224   :  { %4066 = vst [vmem:[#allocation33_spill] sm:$0xff] %v3573_v34 }
 0x22c   :  { %v2627_v48 = vpop.eup %2626 }
 0x22d   :  { %v852_v29 = vmul.f32 %v2627_v48, %v2623_v22  ;;  %v3557_v22 = vld [vmem:[#allocation4 + $0x50] sm:$0xff]  ;;  %v3563_v48 = vld [vmem:[#allocation4 + $0x38] sm:$0xff] }
 0x22e   :  { %v2629_v46 = vpop.eup %2628  ;;  %4061 = vst [vmem:[#allocation21_spill] sm:$0xff] %v3557_v22  ;;  %4063 = vst [vmem:[#allocation22_spill] sm:$0xff] %v3563_v48 }
 0x22f   :  { %v851_v40 = vmul.f32 %v2629_v46, %v3324_v49  ;;  %v3421_v49 = vld [vmem:[#allocation4 + $0x1e8] sm:$0xff]  ;;  %v3569_v46 = vld [vmem:[#allocation4 + $0x30] sm:$0xff] }
 0x230   :  { %v2631_v7 = vpop.eup %2630  ;;  %4049 = vst [vmem:[#allocation15_spill] sm:$0xff] %v3421_v49  ;;  %1172 = vmatprep.subr.mxu0 %v3421_v49  ;;  %4065 = vst [vmem:[#allocation23_spill] sm:$0xff] %v3569_v46 }
 0x231   :  { %v3405_v42 = vadd.f32 %v852_v29, %v851_v40  ;;  %v3567_v29 = vld [vmem:[#allocation4 + $0x20] sm:$0xff]  ;;  %v3575_v40 = vld [vmem:[#allocation4 + $0x18] sm:$0xff] }
 0x232   :  { %4064 = vst [vmem:[#allocation32_spill] sm:$0xff] %v3567_v29  ;;  %4067 = vst [vmem:[#allocation24_spill] sm:$0xff] %v3575_v40 }
 0x233   :  { %2632 = vtanh.f32 %v3405_v42 }
 0x240   :  { %v2633_v8 = vpop.eup %2632 }
 0x241   :  { %v3408_v9 = vmul.f32 %v2633_v8, %v2631_v7  ;;  %v3579_v7 = vld [vmem:[#allocation4] sm:$0xff]  ;;  %v3581_v8 = vld [vmem:[#allocation4 + $0x10] sm:$0xff] }
 0x242   :  { %4068 = vst [vmem:[#allocation48_spill] sm:$0xff] %v3579_v7  ;;  %4069 = vst [vmem:[#allocation50_spill] sm:$0xff] %v3581_v8 }
 0x243   :  { %4048 = vst [vmem:[#allocation14_spill] sm:$0xff] %v3408_v9  ;;  %994 = vmatmul.mubr.f32.vlgmr.msra.gmra.mxu0 %v3408_v9  ;;  %1065 = vmatmul.mubr.f32.vlgmr.msra.gmra.mxu1 %v3408_v9 }
 0x244   :  { %1244 = vmatpush1.msra.mxu1 %v3043_v50  ;;  %1236 = vmatprep.mubr.f32.mxu0 %v4040_v38  ;;  %v3424_v50 = vld [vmem:[#allocation4 + $0x1e0] sm:$0xff] }
 0x245   :  { %1245 = vmatprep.subr.mxu1 %v3047_v51  ;;  %1307 = vmatprep.mubr.f32.mxu1 %v4040_v38  ;;  %v3427_v51 = vld [vmem:[#allocation4 + $0x1c8] sm:$0xff] }
 0x246   :  { %1246 = vmatpush1.msra.mxu1 %v3052_v52  ;;  %1173 = vmatpush1.msra.mxu0 %v3424_v50  ;;  %v3430_v52 = vld [vmem:[#allocation4 + $0x1c0] sm:$0xff] }
 0x247   :  { %1247 = vmatprep.subr.mxu1 %v3055_v53  ;;  %1174 = vmatprep.subr.mxu0 %v3427_v51  ;;  %v3433_v53 = vld [vmem:[#allocation4 + $0x1a8] sm:$0xff] }
 0x248   :  { %1248 = vmatpush1.msra.mxu1 %v3059_v54  ;;  %1175 = vmatpush1.msra.mxu0 %v3430_v52  ;;  %v3436_v54 = vld [vmem:[#allocation4 + $0x1a0] sm:$0xff] }
 0x249   :  { %1249 = vmatprep.subr.mxu1 %v3063_v55  ;;  %1176 = vmatprep.subr.mxu0 %v3433_v53  ;;  %v3439_v55 = vld [vmem:[#allocation4 + $0x188] sm:$0xff] }
 0x24a   :  { %1250 = vmatpush1.msra.mxu1 %v3067_v56  ;;  %1177 = vmatpush1.msra.mxu0 %v3436_v54  ;;  %v3442_v56 = vld [vmem:[#allocation4 + $0x180] sm:$0xff] }
 0x24b   :  { %1178 = vmatprep.subr.mxu0 %v3439_v55  ;;  %1251 = vmatprep.subr.mxu1 %v3447_v12 }
 0x24c   :  { %1179 = vmatpush1.msra.mxu0 %v3442_v56  ;;  %1252 = vmatpush1.msra.mxu1 %v3453_v14 }
 0x24d   :  { %1180 = vmatprep.subr.mxu0 %v3445_v11  ;;  %1253 = vmatprep.subr.mxu1 %v3459_v17 }
 0x24e   :  { %1181 = vmatpush1.msra.mxu0 %v3451_v13  ;;  %1254 = vmatpush1.msra.mxu1 %v3465_v20 }
 0x24f   :  { %1182 = vmatprep.subr.mxu0 %v3457_v16  ;;  %1255 = vmatprep.subr.mxu1 %v3471_v24 }
 0x250   :  { %1183 = vmatpush1.msra.mxu0 %v3463_v18  ;;  %1256 = vmatpush1.msra.mxu1 %v3477_v27 }
 0x251   :  { %1184 = vmatprep.subr.mxu0 %v3469_v23  ;;  %1257 = vmatprep.subr.mxu1 %v3483_v35 }
 0x252   :  { %1185 = vmatpush1.msra.mxu0 %v3475_v25  ;;  %1258 = vmatpush1.msra.mxu1 %v3489_v37 }
 0x253   :  { %1186 = vmatprep.subr.mxu0 %v3481_v30  ;;  %1259 = vmatprep.subr.mxu1 %v3493_v58 }
 0x254   :  { %1187 = vmatpush1.msra.mxu0 %v3485_v36  ;;  %1260 = vmatpush1.msra.mxu1 %v3499_v61 }
 0x255   :  { %1188 = vmatprep.subr.mxu0 %v3491_v57  ;;  %1261 = vmatprep.subr.mxu1 %v3505_v63 }
 0x256   :  { %1189 = vmatpush1.msra.mxu0 %v3497_v60  ;;  %1262 = vmatpush1.msra.mxu1 %v3509_v2 }
 0x257   :  { %1190 = vmatprep.subr.mxu0 %v3501_v62  ;;  %1263 = vmatprep.subr.mxu1 %v3515_v4 }
 0x258   :  { %1191 = vmatpush1.msra.mxu0 %v3507_v1  ;;  %1264 = vmatpush1.msra.mxu1 %v3521_v10 }
 0x259   :  { %1192 = vmatprep.subr.mxu0 %v3513_v3  ;;  %1265 = vmatprep.subr.mxu1 %v3527_v19 }
 0x25a   :  { %1193 = vmatpush1.msra.mxu0 %v3519_v5  ;;  %1266 = vmatpush1.msra.mxu1 %v3533_v31 }
 0x25b   :  { %1194 = vmatprep.subr.mxu0 %v3525_v15  ;;  %1267 = vmatprep.subr.mxu1 %v3539_v47  ;;  %v4072_v47 = vld [vmem:[#allocation36_spill] sm:$0xff] }
 0x25c   :  { %1195 = vmatpush1.msra.mxu0 %v3531_v6  ;;  %1268 = vmatpush1.msra.mxu1 %v3545_v28  ;;  %v4071_v28 = vld [vmem:[#allocation37_spill] sm:$0xff] }
 0x25d   :  { %1196 = vmatprep.subr.mxu0 %v3537_v33  ;;  %1269 = vmatprep.subr.mxu1 %v3551_v32 }
 0x25e   :  { %1197 = vmatpush1.msra.mxu0 %v3543_v39  ;;  %1270 = vmatpush1.msra.mxu1 %v3557_v22 }
 0x25f   :  { %1198 = vmatprep.subr.mxu0 %v3549_v44  ;;  %1271 = vmatprep.subr.mxu1 %v3563_v48 }
 0x260   :  { %1199 = vmatpush1.msra.mxu0 %v3555_v26  ;;  %1272 = vmatpush1.msra.mxu1 %v3569_v46 }
 0x261   :  { %1200 = vmatprep.subr.mxu0 %v3561_v0  ;;  %1273 = vmatprep.subr.mxu1 %v3575_v40 }
 0x262   :  { %1201 = vmatpush1.msra.mxu0 %v3567_v29  ;;  %1274 = vmatpush1.msra.mxu1 %v3581_v8 }
 0x263   :  { %1202 = vmatprep.subr.mxu0 %v3573_v34 }
 0x264   :  { %1203 = vmatpush1.msra.mxu0 %v3579_v7 }
 0x265   :  { %1415 = vmatprep.subr.mxu0 %v3421_v49 }
 0x303   :  { %v995_v41 = vpop.f32.mrf.mxu0  ;;  %v1066_v22 = vpop.f32.mrf.mxu1 }
 0x304   :  { %v1071_v59 = vadd.f32 %v995_v41, %v3288_v21  ;;  %v1073_v31 = vadd.f32 %v1066_v22, %v4072_v47  ;;  %v3648_v22 = vld [vmem:[#allocation4 + $0x1b8] sm:$0xff] }
 0x305   :  { %v997_v43 = vpop.f32.mrf.mxu0  ;;  %v1068_v32 = vpop.f32.mrf.mxu1 }
 0x306   :  { %v2507_v9 = vmul.f32 -1.442695, %v1071_v59  ;;  %v1072_v48 = vadd.f32 %v997_v43, %v4070_v45  ;;  %v1074_v40 = vadd.f32 %v1068_v32, %v4071_v28 }
 0x308   :  { %2634 = vpow2.f32 %v2507_v9  ;;  %v2508_v46 = vmul.f32 -1.442695, %v1072_v48  ;;  %v2509_v19 = vmul.f32 -1.442695, %v1074_v40  ;;  %v3651_v40 = vld [vmem:[#allocation4 + $0x1b0] sm:$0xff] }
 0x30a   :  { %2636 = vpow2.f32 %v2508_v46 }
 0x30b   :  { %2638 = vtanh.f32 %v1073_v31 }
 0x30c   :  { %2640 = vpow2.f32 %v2509_v19  ;;  %v3645_v19 = vld [vmem:[#allocation4 + $0x1d0] sm:$0xff] }
 0x315   :  { %v2635_v8 = vpop.eup %2634 }
 0x316   :  { %v1078_v10 = vadd.f32 1.0, %v2635_v8  ;;  %v3654_v8 = vld [vmem:[#allocation4 + $0x198] sm:$0xff] }
 0x317   :  { %v2637_v4 = vpop.eup %2636 }
 0x318   :  { %2642 = vrcp.f32 %v1078_v10  ;;  %v1084_v21 = vadd.f32 1.0, %v2637_v4  ;;  %v2639_v41 = vpop.eup %2638  ;;  %v3639_v4 = vld [vmem:[#allocation4 + $0x1f0] sm:$0xff]  ;;  %v3642_v10 = vld [vmem:[#allocation4 + $0x1d8] sm:$0xff] }
 0x319   :  { %v2641_v43 = vpop.eup %2640 }
 0x31a   :  { %2644 = vrcp.f32 %v1084_v21  ;;  %v1091_v48 = vadd.f32 1.0, %v2641_v43  ;;  %v3657_v21 = vld [vmem:[#allocation4 + $0x190] sm:$0xff]  ;;  %v4076_v43 = vld [vmem:[#allocation16_spill] sm:$0xff] }
 0x31c   :  { %2646 = vrcp.f32 %v1091_v48  ;;  %v4080_v48 = vld [vmem:[#allocation19_spill] sm:$0xff] }
 0x325   :  { %v2643_v45 = vpop.eup %2642 }
 0x326   :  { %v1095_v59 = vmul.f32 %v2643_v45, %v2639_v41  ;;  %v4075_v41 = vld [vmem:[#allocation25_spill] sm:$0xff]  ;;  %v4077_v45 = vld [vmem:[#allocation26_spill] sm:$0xff] }
 0x327   :  { %v2645_v9 = vpop.eup %2644 }
 0x328   :  { %v1094_v46 = vmul.f32 %v2645_v9, %v3405_v42  ;;  %v3636_v42 = vld [vmem:[#allocation4 + $0x1f8] sm:$0xff]  ;;  %v4079_v9 = vld [vmem:[#allocation18_spill] sm:$0xff] }
 0x329   :  { %v2647_v47 = vpop.eup %2646  ;;  %4074 = vst [vmem:[#allocation34_spill] sm:$0xff] %v3636_v42  ;;  %1486 = vmatprep.subr.mxu1 %v3636_v42 }
 0x32a   :  { %v3595_v28 = vadd.f32 %v1095_v59, %v1094_v46  ;;  %v4078_v59 = vld [vmem:[#allocation17_spill] sm:$0xff]  ;;  %v4081_v46 = vld [vmem:[#allocation20_spill] sm:$0xff] }
 0x32c   :  { %2648 = vtanh.f32 %v3595_v28 }
 0x339   :  { %v2649_v31 = vpop.eup %2648 }
 0x33a   :  { %v3598_v32 = vmul.f32 %v2649_v31, %v2647_v47  ;;  %v4082_v47 = vld [vmem:[#allocation21_spill] sm:$0xff]  ;;  %v4083_v31 = vld [vmem:[#allocation22_spill] sm:$0xff] }
 0x33c   :  { %4073 = vst [vmem:[#allocation35_spill] sm:$0xff] %v3598_v32  ;;  %1237 = vmatmul.mubr.f32.vlgmr.msra.gmra.mxu0 %v3598_v32  ;;  %1308 = vmatmul.mubr.f32.vlgmr.msra.gmra.mxu1 %v3598_v32  ;;  %v4084_v32 = vld [vmem:[#allocation23_spill] sm:$0xff] }
 0x33d   :  { %1416 = vmatpush1.msra.mxu0 %v3424_v50  ;;  %1479 = vmatprep.mubr.f32.mxu0 %v4040_v38 }
 0x33e   :  { %1417 = vmatprep.subr.mxu0 %v3427_v51  ;;  %1550 = vmatprep.mubr.f32.mxu1 %v4040_v38  ;;  %v4086_v38 = vld [vmem:[#allocation50_spill] sm:$0xff] }
 0x33f   :  { %1418 = vmatpush1.msra.mxu0 %v3430_v52  ;;  %1487 = vmatpush1.msra.mxu1 %v3639_v4 }
 0x340   :  { %1419 = vmatprep.subr.mxu0 %v3433_v53  ;;  %1488 = vmatprep.subr.mxu1 %v3642_v10 }
 0x341   :  { %1420 = vmatpush1.msra.mxu0 %v3436_v54  ;;  %1489 = vmatpush1.msra.mxu1 %v3645_v19 }
 0x342   :  { %1421 = vmatprep.subr.mxu0 %v3439_v55  ;;  %1490 = vmatprep.subr.mxu1 %v3648_v22 }
 0x343   :  { %1422 = vmatpush1.msra.mxu0 %v3442_v56  ;;  %1491 = vmatpush1.msra.mxu1 %v3651_v40 }
 0x344   :  { %1423 = vmatprep.subr.mxu0 %v3445_v11  ;;  %1492 = vmatprep.subr.mxu1 %v3654_v8 }
 0x345   :  { %1424 = vmatpush1.msra.mxu0 %v3451_v13  ;;  %1493 = vmatpush1.msra.mxu1 %v3657_v21 }
 0x346   :  { %1425 = vmatprep.subr.mxu0 %v3457_v16  ;;  %1494 = vmatprep.subr.mxu1 %v3447_v12 }
 0x347   :  { %1426 = vmatpush1.msra.mxu0 %v3463_v18  ;;  %1495 = vmatpush1.msra.mxu1 %v3453_v14 }
 0x348   :  { %1427 = vmatprep.subr.mxu0 %v3469_v23  ;;  %1496 = vmatprep.subr.mxu1 %v3459_v17 }
 0x349   :  { %1428 = vmatpush1.msra.mxu0 %v3475_v25  ;;  %1497 = vmatpush1.msra.mxu1 %v3465_v20 }
 0x34a   :  { %1429 = vmatprep.subr.mxu0 %v3481_v30  ;;  %1498 = vmatprep.subr.mxu1 %v3471_v24 }
 0x34b   :  { %1430 = vmatpush1.msra.mxu0 %v3485_v36  ;;  %1499 = vmatpush1.msra.mxu1 %v3477_v27 }
 0x34c   :  { %1431 = vmatprep.subr.mxu0 %v3491_v57  ;;  %1500 = vmatprep.subr.mxu1 %v3483_v35 }
 0x34d   :  { %1432 = vmatpush1.msra.mxu0 %v3497_v60  ;;  %1501 = vmatpush1.msra.mxu1 %v3489_v37 }
 0x34e   :  { %1433 = vmatprep.subr.mxu0 %v3501_v62  ;;  %1502 = vmatprep.subr.mxu1 %v3493_v58 }
 0x34f   :  { %1434 = vmatpush1.msra.mxu0 %v3507_v1  ;;  %1503 = vmatpush1.msra.mxu1 %v3499_v61 }
 0x350   :  { %1435 = vmatprep.subr.mxu0 %v3513_v3  ;;  %1504 = vmatprep.subr.mxu1 %v3505_v63 }
 0x351   :  { %1436 = vmatpush1.msra.mxu0 %v3519_v5  ;;  %1505 = vmatpush1.msra.mxu1 %v3509_v2 }
 0x352   :  { %1437 = vmatprep.subr.mxu0 %v3525_v15  ;;  %1506 = vmatprep.subr.mxu1 %v4075_v41 }
 0x353   :  { %1438 = vmatpush1.msra.mxu0 %v3531_v6  ;;  %1507 = vmatpush1.msra.mxu1 %v4076_v43 }
 0x354   :  { %1439 = vmatprep.subr.mxu0 %v3537_v33  ;;  %1508 = vmatprep.subr.mxu1 %v4077_v45 }
 0x355   :  { %1440 = vmatpush1.msra.mxu0 %v3543_v39  ;;  %1509 = vmatpush1.msra.mxu1 %v4078_v59  ;;  %v4089_v39 = vld [vmem:[#allocation39_spill] sm:$0xff] }
 0x356   :  { %1441 = vmatprep.subr.mxu0 %v3549_v44  ;;  %1510 = vmatprep.subr.mxu1 %v4079_v9  ;;  %v4088_v44 = vld [vmem:[#allocation53_spill] sm:$0xff]  ;;  %v4090_v9 = vld [vmem:[#allocation38_spill] sm:$0xff] }
 0x357   :  { %1442 = vmatpush1.msra.mxu0 %v3555_v26  ;;  %1511 = vmatpush1.msra.mxu1 %v4080_v48 }
 0x358   :  { %1443 = vmatprep.subr.mxu0 %v3561_v0  ;;  %1512 = vmatprep.subr.mxu1 %v4081_v46 }
 0x359   :  { %1444 = vmatpush1.msra.mxu0 %v3567_v29  ;;  %1513 = vmatpush1.msra.mxu1 %v4082_v47 }
 0x35a   :  { %1445 = vmatprep.subr.mxu0 %v3573_v34  ;;  %1514 = vmatprep.subr.mxu1 %v4083_v31  ;;  %v4087_v34 = vld [vmem:[#allocation52_spill] sm:$0xff] }
 0x35b   :  { %1446 = vmatpush1.msra.mxu0 %v3579_v7  ;;  %1515 = vmatpush1.msra.mxu1 %v4084_v32 }
 0x35c   :  { %1658 = vmatprep.subr.mxu0 %v3421_v49  ;;  %v4085_v49 = vld [vmem:[#allocation24_spill] sm:$0xff] }
 0x35d   :  { %1516 = vmatprep.subr.mxu1 %v4085_v49 }
 0x35e   :  { %1517 = vmatpush1.msra.mxu1 %v4086_v38 }
 0x35f   :  { %1729 = vmatprep.subr.mxu1 %v3636_v42 }
 0x3fc   :  { %v1238_v7 = vpop.f32.mrf.mxu0  ;;  %v1309_v46 = vpop.f32.mrf.mxu1 }
 0x3fd   :  { %v1314_v29 = vadd.f32 %v1238_v7, %v4087_v34  ;;  %v1316_v49 = vadd.f32 %v1309_v46, %v4090_v9  ;;  %v4096_v9 = vld [vmem:[#allocation19_spill] sm:$0xff]  ;;  %v4097_v46 = vld [vmem:[#allocation29_spill] sm:$0xff] }
 0x3fe   :  { %v1240_v0 = vpop.f32.mrf.mxu0  ;;  %v1311_v31 = vpop.f32.mrf.mxu1 }
 0x3ff   :  { %v2510_v26 = vmul.f32 -1.442695, %v1314_v29  ;;  %v1315_v48 = vadd.f32 %v1240_v0, %v4088_v44  ;;  %v1317_v32 = vadd.f32 %v1311_v31, %v4089_v39  ;;  %v4098_v31 = vld [vmem:[#allocation20_spill] sm:$0xff] }
 0x401   :  { %2650 = vpow2.f32 %v2510_v26  ;;  %v2511_v47 = vmul.f32 -1.442695, %v1315_v48  ;;  %v2512_v33 = vmul.f32 -1.442695, %v1317_v32 }
 0x403   :  { %2652 = vpow2.f32 %v2511_v47 }
 0x404   :  { %2654 = vtanh.f32 %v1316_v49 }
 0x405   :  { %2656 = vpow2.f32 %v2512_v33  ;;  %v4092_v33 = vld [vmem:[#allocation17_spill] sm:$0xff] }
 0x40e   :  { %v2651_v38 = vpop.eup %2650 }
 0x40f   :  { %v1321_v59 = vadd.f32 1.0, %v2651_v38 }
 0x410   :  { %v2653_v42 = vpop.eup %2652 }
 0x411   :  { %2658 = vrcp.f32 %v1321_v59  ;;  %v1327_v34 = vadd.f32 1.0, %v2653_v42  ;;  %v2655_v29 = vpop.eup %2654  ;;  %v4094_v42 = vld [vmem:[#allocation18_spill] sm:$0xff]  ;;  %v4095_v59 = vld [vmem:[#allocation28_spill] sm:$0xff] }
 0x412   :  { %v2657_v44 = vpop.eup %2656 }
 0x413   :  { %2660 = vrcp.f32 %v1327_v34  ;;  %v1334_v48 = vadd.f32 1.0, %v2657_v44  ;;  %v4099_v34 = vld [vmem:[#allocation30_spill] sm:$0xff]  ;;  %v4101_v44 = vld [vmem:[#allocation31_spill] sm:$0xff] }
 0x415   :  { %2662 = vrcp.f32 %v1334_v48  ;;  %v4105_v48 = vld [vmem:[#allocation33_spill] sm:$0xff] }
 0x41e   :  { %v2659_v26 = vpop.eup %2658 }
 0x41f   :  { %v1338_v0 = vmul.f32 %v2659_v26, %v2655_v29  ;;  %v4100_v29 = vld [vmem:[#allocation21_spill] sm:$0xff]  ;;  %v4102_v26 = vld [vmem:[#allocation22_spill] sm:$0xff] }
 0x420   :  { %v2661_v7 = vpop.eup %2660 }
 0x421   :  { %v1337_v47 = vmul.f32 %v2661_v7, %v3595_v28  ;;  %v4093_v28 = vld [vmem:[#allocation27_spill] sm:$0xff] }
 0x422   :  { %v2663_v38 = vpop.eup %2662  ;;  %v4104_v7 = vld [vmem:[#allocation23_spill] sm:$0xff] }
 0x423   :  { %v3690_v39 = vadd.f32 %v1338_v0, %v1337_v47  ;;  %v4103_v0 = vld [vmem:[#allocation32_spill] sm:$0xff] }
 0x424   :  { %v4106_v47 = vld [vmem:[#allocation24_spill] sm:$0xff] }
 0x425   :  { %2664 = vtanh.f32 %v3690_v39 }
 0x432   :  { %v2665_v49 = vpop.eup %2664 }
 0x433   :  { %v3693_v32 = vmul.f32 %v2665_v49, %v2663_v38  ;;  %v4107_v38 = vld [vmem:[#allocation48_spill] sm:$0xff]  ;;  %v4108_v49 = vmov 0.0  }
 0x435   :  { %4091 = vst [vmem:[#allocation51_spill] sm:$0xff] %v3693_v32  ;;  %1480 = vmatmul.mubr.f32.vlgmr.msra.gmra.mxu0 %v3693_v32  ;;  %1551 = vmatmul.mubr.f32.vlgmr.msra.gmra.mxu1 %v3693_v32  ;;  %v4109_v32 = vld [vmem:[#allocation50_spill] sm:$0xff] }
 0x436   :  { %1659 = vmatpush1.msra.mxu0 %v3424_v50  ;;  %1730 = vmatpush1.msra.mxu1 %v3639_v4 }
 0x437   :  { %1660 = vmatprep.subr.mxu0 %v3427_v51  ;;  %1731 = vmatprep.subr.mxu1 %v3642_v10 }
 0x438   :  { %1661 = vmatpush1.msra.mxu0 %v3430_v52  ;;  %1732 = vmatpush1.msra.mxu1 %v3645_v19 }
 0x439   :  { %1662 = vmatprep.subr.mxu0 %v3433_v53  ;;  %1733 = vmatprep.subr.mxu1 %v3648_v22 }
 0x43a   :  { %1663 = vmatpush1.msra.mxu0 %v3436_v54  ;;  %1734 = vmatpush1.msra.mxu1 %v3651_v40 }
 0x43b   :  { %1664 = vmatprep.subr.mxu0 %v3439_v55  ;;  %1735 = vmatprep.subr.mxu1 %v3654_v8 }
 0x43c   :  { %1665 = vmatpush1.msra.mxu0 %v3442_v56  ;;  %1736 = vmatpush1.msra.mxu1 %v3657_v21 }
 0x43d   :  { %1666 = vmatprep.subr.mxu0 %v3445_v11  ;;  %1737 = vmatprep.subr.mxu1 %v3447_v12 }
 0x43e   :  { %1667 = vmatpush1.msra.mxu0 %v3451_v13  ;;  %1738 = vmatpush1.msra.mxu1 %v3453_v14 }
 0x43f   :  { %1668 = vmatprep.subr.mxu0 %v3457_v16  ;;  %1739 = vmatprep.subr.mxu1 %v3459_v17 }
 0x440   :  { %1669 = vmatpush1.msra.mxu0 %v3463_v18  ;;  %1740 = vmatpush1.msra.mxu1 %v3465_v20 }
 0x441   :  { %1670 = vmatprep.subr.mxu0 %v3469_v23  ;;  %1741 = vmatprep.subr.mxu1 %v3471_v24 }
 0x442   :  { %1671 = vmatpush1.msra.mxu0 %v3475_v25  ;;  %1742 = vmatpush1.msra.mxu1 %v3477_v27 }
 0x443   :  { %1672 = vmatprep.subr.mxu0 %v3481_v30  ;;  %1743 = vmatprep.subr.mxu1 %v3483_v35 }
 0x444   :  { %1673 = vmatpush1.msra.mxu0 %v3485_v36  ;;  %1744 = vmatpush1.msra.mxu1 %v3489_v37 }
 0x445   :  { %1674 = vmatprep.subr.mxu0 %v3491_v57  ;;  %1745 = vmatprep.subr.mxu1 %v3493_v58 }
 0x446   :  { %1675 = vmatpush1.msra.mxu0 %v3497_v60  ;;  %1746 = vmatpush1.msra.mxu1 %v3499_v61 }
 0x447   :  { %1676 = vmatprep.subr.mxu0 %v3501_v62  ;;  %1747 = vmatprep.subr.mxu1 %v3505_v63 }
 0x448   :  { %1677 = vmatpush1.msra.mxu0 %v3507_v1  ;;  %1748 = vmatpush1.msra.mxu1 %v3509_v2 }
 0x449   :  { %1678 = vmatprep.subr.mxu0 %v3513_v3  ;;  %1749 = vmatprep.subr.mxu1 %v4075_v41 }
 0x44a   :  { %1679 = vmatpush1.msra.mxu0 %v3519_v5  ;;  %1750 = vmatpush1.msra.mxu1 %v4076_v43 }
 0x44b   :  { %1680 = vmatprep.subr.mxu0 %v3525_v15  ;;  %1751 = vmatprep.subr.mxu1 %v4077_v45 }
 0x44c   :  { %1681 = vmatpush1.msra.mxu0 %v3531_v6  ;;  %1752 = vmatpush1.msra.mxu1 %v4092_v33 }
 0x44d   :  { %1682 = vmatprep.subr.mxu0 %v4093_v28  ;;  %1753 = vmatprep.subr.mxu1 %v4094_v42  ;;  %v4115_v42 = vld [vmem:[#allocation40_spill] sm:$0xff] }
 0x44e   :  { %1683 = vmatpush1.msra.mxu0 %v4095_v59  ;;  %1754 = vmatpush1.msra.mxu1 %v4096_v9  ;;  %v4114_v59 = vld [vmem:[#allocation41_spill] sm:$0xff] }
 0x44f   :  { %1684 = vmatprep.subr.mxu0 %v4097_v46  ;;  %1755 = vmatprep.subr.mxu1 %v4098_v31 }
 0x450   :  { %1685 = vmatpush1.msra.mxu0 %v4099_v34  ;;  %1756 = vmatpush1.msra.mxu1 %v4100_v29  ;;  %v4110_v29 = vld [vmem:[#allocation15_spill] sm:$0xff] }
 0x451   :  { %1686 = vmatprep.subr.mxu0 %v4101_v44  ;;  %1757 = vmatprep.subr.mxu1 %v4102_v26  ;;  %v4111_v44 = vld [vmem:[#allocation34_spill] sm:$0xff] }
 0x452   :  { %1687 = vmatpush1.msra.mxu0 %v4103_v0  ;;  %1758 = vmatpush1.msra.mxu1 %v4104_v7  ;;  %v4112_v0 = vld [vmem:[#allocation54_spill] sm:$0xff] }
 0x453   :  { %1688 = vmatprep.subr.mxu0 %v4105_v48  ;;  %1759 = vmatprep.subr.mxu1 %v4106_v47  ;;  %v4113_v48 = vld [vmem:[#allocation55_spill] sm:$0xff] }
 0x454   :  { %1689 = vmatpush1.msra.mxu0 %v4107_v38  ;;  %1722 = vmatprep.mubr.f32.mxu0 %v4108_v49 }
 0x455   :  { %1760 = vmatpush1.msra.mxu1 %v4109_v32  ;;  %1793 = vmatprep.mubr.f32.mxu1 %v4108_v49 }
 0x456   :  { %1901 = vmatprep.subr.mxu0 %v4110_v29  ;;  %1972 = vmatprep.subr.mxu1 %v4111_v44 }
 0x4f5   :  { %v1481_v26 = vpop.f32.mrf.mxu0  ;;  %v1552_v47 = vpop.f32.mrf.mxu1 }
 0x4f6   :  { %v1557_v34 = vadd.f32 %v1481_v26, %v4112_v0  ;;  %v1559_v49 = vadd.f32 %v1552_v47, %v4115_v42 }
 0x4f7   :  { %v1483_v7 = vpop.f32.mrf.mxu0  ;;  %v1554_v9 = vpop.f32.mrf.mxu1 }
 0x4f8   :  { %v2513_v31 = vmul.f32 -1.442695, %v1557_v34  ;;  %v1558_v46 = vadd.f32 %v1483_v7, %v4113_v48  ;;  %v1560_v32 = vadd.f32 %v1554_v9, %v4114_v59 }
 0x4fa   :  { %2666 = vpow2.f32 %v2513_v31  ;;  %v2514_v38 = vmul.f32 -1.442695, %v1558_v46  ;;  %v2515_v28 = vmul.f32 -1.442695, %v1560_v32 }
 0x4fc   :  { %2668 = vpow2.f32 %v2514_v38 }
 0x4fd   :  { %2670 = vtanh.f32 %v1559_v49 }
 0x4fe   :  { %2672 = vpow2.f32 %v2515_v28 }
 0x507   :  { %v2667_v29 = vpop.eup %2666 }
 0x508   :  { %v1564_v33 = vadd.f32 1.0, %v2667_v29 }
 0x509   :  { %v2669_v44 = vpop.eup %2668 }
 0x50a   :  { %2674 = vrcp.f32 %v1564_v33  ;;  %v1570_v26 = vadd.f32 1.0, %v2669_v44  ;;  %v2671_v34 = vpop.eup %2670 }
 0x50b   :  { %v2673_v0 = vpop.eup %2672 }
 0x50c   :  { %2676 = vrcp.f32 %v1570_v26  ;;  %v1577_v48 = vadd.f32 1.0, %v2673_v0 }
 0x50e   :  { %2678 = vrcp.f32 %v1577_v48  ;;  %v2136_v48 = vld [vmem:[#allocation4 + $0x1c0] sm:$0xff] }
 0x517   :  { %v2675_v31 = vpop.eup %2674 }
 0x518   :  { %v1581_v7 = vmul.f32 %v2675_v31, %v2671_v34 }
 0x519   :  { %v2677_v46 = vpop.eup %2676 }
 0x51a   :  { %v1580_v38 = vmul.f32 %v2677_v46, %v3690_v39  ;;  %v2140_v46 = vld [vmem:[#allocation4 + $0x1e0] sm:$0xff] }
 0x51b   :  { %v2679_v32 = vpop.eup %2678 }
 0x51c   :  { %v3768_v59 = vadd.f32 %v1581_v7, %v1580_v38  ;;  %v2141_v7 = vld [vmem:[#allocation4 + $0x1e8] sm:$0xff]  ;;  %v2132_v38 = vld [vmem:[#allocation4 + $0x1a0] sm:$0xff] }
 0x51e   :  { %2680 = vtanh.f32 %v3768_v59 }
 0x52b   :  { %v2681_v42 = vpop.eup %2680 }
 0x52c   :  { %v3771_v9 = vmul.f32 %v2681_v42, %v2679_v32  ;;  %v2126_v32 = vld [vmem:[#allocation4 + $0x170] sm:$0xff]  ;;  %v2120_v42 = vld [vmem:[#allocation4 + $0x140] sm:$0xff] }
 0x52e   :  { %1723 = vmatmul.mubr.f32.vlgmr.msra.gmra.mxu0 %v3771_v9  ;;  %1794 = vmatmul.mubr.f32.vlgmr.msra.gmra.mxu1 %v3771_v9 }
 0x52f   :  { %1902 = vmatpush1.msra.mxu0 %v3424_v50  ;;  %1973 = vmatpush1.msra.mxu1 %v3639_v4  ;;  %v4116_v50 = vld [vmem:[#allocation17_spill] sm:$0xff] }
 0x530   :  { %1903 = vmatprep.subr.mxu0 %v3427_v51  ;;  %1974 = vmatprep.subr.mxu1 %v3642_v10  ;;  %v4117_v51 = vld [vmem:[#allocation27_spill] sm:$0xff] }
 0x531   :  { %1904 = vmatpush1.msra.mxu0 %v3430_v52  ;;  %1975 = vmatpush1.msra.mxu1 %v3645_v19  ;;  %v4118_v52 = vld [vmem:[#allocation18_spill] sm:$0xff] }
 0x532   :  { %1905 = vmatprep.subr.mxu0 %v3433_v53  ;;  %1976 = vmatprep.subr.mxu1 %v3648_v22  ;;  %v4119_v53 = vld [vmem:[#allocation28_spill] sm:$0xff] }
 0x533   :  { %1906 = vmatpush1.msra.mxu0 %v3436_v54  ;;  %1977 = vmatpush1.msra.mxu1 %v3651_v40  ;;  %v4120_v54 = vld [vmem:[#allocation19_spill] sm:$0xff] }
 0x534   :  { %1907 = vmatprep.subr.mxu0 %v3439_v55  ;;  %1978 = vmatprep.subr.mxu1 %v3654_v8  ;;  %v4121_v55 = vld [vmem:[#allocation29_spill] sm:$0xff] }
 0x535   :  { %1908 = vmatpush1.msra.mxu0 %v3442_v56  ;;  %1979 = vmatpush1.msra.mxu1 %v3657_v21  ;;  %v4122_v56 = vld [vmem:[#allocation20_spill] sm:$0xff] }
 0x536   :  { %1909 = vmatprep.subr.mxu0 %v3445_v11  ;;  %1980 = vmatprep.subr.mxu1 %v3447_v12  ;;  %v4123_v11 = vld [vmem:[#allocation30_spill] sm:$0xff]  ;;  %v4124_v12 = vld [vmem:[#allocation21_spill] sm:$0xff] }
 0x537   :  { %1910 = vmatpush1.msra.mxu0 %v3451_v13  ;;  %1981 = vmatpush1.msra.mxu1 %v3453_v14  ;;  %v4125_v13 = vld [vmem:[#allocation31_spill] sm:$0xff]  ;;  %v4126_v14 = vld [vmem:[#allocation22_spill] sm:$0xff] }
 0x538   :  { %1911 = vmatprep.subr.mxu0 %v3457_v16  ;;  %1982 = vmatprep.subr.mxu1 %v3459_v17  ;;  %v4127_v16 = vld [vmem:[#allocation32_spill] sm:$0xff]  ;;  %v4128_v17 = vld [vmem:[#allocation23_spill] sm:$0xff] }
 0x539   :  { %1912 = vmatpush1.msra.mxu0 %v3463_v18  ;;  %1983 = vmatpush1.msra.mxu1 %v3465_v20  ;;  %v4129_v18 = vld [vmem:[#allocation33_spill] sm:$0xff]  ;;  %v4130_v20 = vld [vmem:[#allocation24_spill] sm:$0xff] }
 0x53a   :  { %1913 = vmatprep.subr.mxu0 %v3469_v23  ;;  %1984 = vmatprep.subr.mxu1 %v3471_v24  ;;  %v4131_v23 = vld [vmem:[#allocation48_spill] sm:$0xff]  ;;  %v4132_v24 = vmov 0.0  }
 0x53b   :  { %1914 = vmatpush1.msra.mxu0 %v3475_v25  ;;  %1985 = vmatpush1.msra.mxu1 %v3477_v27  ;;  %v4133_v25 = vld [vmem:[#allocation50_spill] sm:$0xff] }
 0x53c   :  { %1915 = vmatprep.subr.mxu0 %v3481_v30  ;;  %1986 = vmatprep.subr.mxu1 %v3483_v35  ;;  %v4134_v27 = vld [vmem:[#allocation34_spill] sm:$0xff]  ;;  %v4135_v35 = vld [vmem:[#allocation56_spill] sm:$0xff] }
 0x53d   :  { %1916 = vmatpush1.msra.mxu0 %v3485_v36  ;;  %1987 = vmatpush1.msra.mxu1 %v3489_v37 }
 0x53e   :  { %1917 = vmatprep.subr.mxu0 %v3491_v57  ;;  %1988 = vmatprep.subr.mxu1 %v3493_v58  ;;  %v4136_v58 = vld [vmem:[#allocation57_spill] sm:$0xff] }
 0x53f   :  { %1918 = vmatpush1.msra.mxu0 %v3497_v60  ;;  %1989 = vmatpush1.msra.mxu1 %v3499_v61 }
 0x540   :  { %1919 = vmatprep.subr.mxu0 %v3501_v62  ;;  %1990 = vmatprep.subr.mxu1 %v3505_v63 }
 0x541   :  { %1920 = vmatpush1.msra.mxu0 %v3507_v1  ;;  %1991 = vmatpush1.msra.mxu1 %v3509_v2  ;;  %v4137_v1 = vld [vmem:[#allocation43_spill] sm:$0xff] }
 0x542   :  { %1921 = vmatprep.subr.mxu0 %v3513_v3  ;;  %1992 = vmatprep.subr.mxu1 %v4075_v41  ;;  %v4138_v3 = vld [vmem:[#allocation42_spill] sm:$0xff] }
 0x543   :  { %1922 = vmatpush1.msra.mxu0 %v3519_v5  ;;  %1993 = vmatpush1.msra.mxu1 %v4076_v43 }
 0x544   :  { %1923 = vmatprep.subr.mxu0 %v3525_v15  ;;  %1994 = vmatprep.subr.mxu1 %v4077_v45 }
 0x545   :  { %1924 = vmatpush1.msra.mxu0 %v3531_v6  ;;  %1995 = vmatpush1.msra.mxu1 %v4116_v50  ;;  %v2123_v50 = vld [vmem:[#allocation4 + $0x158] sm:$0xff] }
 0x546   :  { %1925 = vmatprep.subr.mxu0 %v4117_v51  ;;  %1996 = vmatprep.subr.mxu1 %v4118_v52  ;;  %v2117_v51 = vld [vmem:[#allocation4 + $0x128] sm:$0xff]  ;;  %v2122_v52 = vld [vmem:[#allocation4 + $0x150] sm:$0xff] }
 0x547   :  { %1926 = vmatpush1.msra.mxu0 %v4119_v53  ;;  %1997 = vmatpush1.msra.mxu1 %v4120_v54  ;;  %v2116_v53 = vld [vmem:[#allocation4 + $0x120] sm:$0xff]  ;;  %v2119_v54 = vld [vmem:[#allocation4 + $0x138] sm:$0xff] }
 0x548   :  { %1927 = vmatprep.subr.mxu0 %v4121_v55  ;;  %1998 = vmatprep.subr.mxu1 %v4122_v56  ;;  %v2113_v55 = vld [vmem:[#allocation4 + $0x108] sm:$0xff]  ;;  %v2118_v56 = vld [vmem:[#allocation4 + $0x130] sm:$0xff] }
 0x549   :  { %1928 = vmatpush1.msra.mxu0 %v4123_v11  ;;  %1999 = vmatpush1.msra.mxu1 %v4124_v12  ;;  %v2112_v11 = vld [vmem:[#allocation4 + $0x100] sm:$0xff]  ;;  %v2115_v12 = vld [vmem:[#allocation4 + $0x118] sm:$0xff] }
 0x54a   :  { %1929 = vmatprep.subr.mxu0 %v4125_v13  ;;  %2000 = vmatprep.subr.mxu1 %v4126_v14  ;;  %v2109_v13 = vld [vmem:[#allocation4 + $0xe8] sm:$0xff]  ;;  %v2114_v14 = vld [vmem:[#allocation4 + $0x110] sm:$0xff] }
 0x54b   :  { %1930 = vmatpush1.msra.mxu0 %v4127_v16  ;;  %2001 = vmatpush1.msra.mxu1 %v4128_v17  ;;  %v2108_v16 = vld [vmem:[#allocation4 + $0xe0] sm:$0xff]  ;;  %v2111_v17 = vld [vmem:[#allocation4 + $0xf8] sm:$0xff] }
 0x54c   :  { %1931 = vmatprep.subr.mxu0 %v4129_v18  ;;  %2002 = vmatprep.subr.mxu1 %v4130_v20  ;;  %v2105_v18 = vld [vmem:[#allocation4 + $0xc8] sm:$0xff]  ;;  %v2110_v20 = vld [vmem:[#allocation4 + $0xf0] sm:$0xff] }
 0x54d   :  { %1932 = vmatpush1.msra.mxu0 %v4131_v23  ;;  %1965 = vmatprep.mubr.f32.mxu0 %v4132_v24  ;;  %v2104_v23 = vld [vmem:[#allocation4 + $0xc0] sm:$0xff] }
 0x54e   :  { %2003 = vmatpush1.msra.mxu1 %v4133_v25  ;;  %2036 = vmatprep.mubr.f32.mxu1 %v4132_v24  ;;  %v2101_v25 = vld [vmem:[#allocation4 + $0xa8] sm:$0xff] }
 0x54f   :  { %2215 = vmatprep.subr.mxu1 %v4134_v27  ;;  %2144 = vmatprep.subr.mxu0 %v2141_v7  ;;  %v2106_v27 = vld [vmem:[#allocation4 + $0xd0] sm:$0xff] }
 0x5ee   :  { %v1724_v30 = vpop.f32.mrf.mxu0  ;;  %v1795_v61 = vpop.f32.mrf.mxu1 }
 0x5ef   :  { %v1800_v36 = vadd.f32 %v1724_v30, %v4135_v35  ;;  %v1802_v5 = vadd.f32 %v1795_v61, %v4138_v3  ;;  %v2100_v30 = vld [vmem:[#allocation4 + $0xa0] sm:$0xff]  ;;  %v2103_v35 = vld [vmem:[#allocation4 + $0xb8] sm:$0xff]  ;;  %v2098_v61 = vld [vmem:[#allocation4 + $0x90] sm:$0xff] }
 0x5f0   :  { %v1726_v37 = vpop.f32.mrf.mxu0  ;;  %v1797_v63 = vpop.f32.mrf.mxu1  ;;  %v2088_v3 = vld [vmem:[#allocation4 + $0x40] sm:$0xff] }
 0x5f1   :  { %v2516_v57 = vmul.f32 -1.442695, %v1800_v36  ;;  %v1801_v60 = vadd.f32 %v1726_v37, %v4136_v58  ;;  %v1803_v2 = vadd.f32 %v1797_v63, %v4137_v1  ;;  %v2097_v36 = vld [vmem:[#allocation4 + $0x88] sm:$0xff]  ;;  %v2102_v37 = vld [vmem:[#allocation4 + $0xb0] sm:$0xff]  ;;  %v2099_v58 = vld [vmem:[#allocation4 + $0x98] sm:$0xff] }
 0x5f2   :  { %v2095_v63 = vld [vmem:[#allocation4 + $0x78] sm:$0xff]  ;;  %v2089_v1 = vld [vmem:[#allocation4 + $0x48] sm:$0xff] }
 0x5f3   :  { %2682 = vpow2.f32 %v2516_v57  ;;  %v2517_v62 = vmul.f32 -1.442695, %v1801_v60  ;;  %v2518_v15 = vmul.f32 -1.442695, %v1803_v2  ;;  %v2096_v57 = vld [vmem:[#allocation4 + $0x80] sm:$0xff]  ;;  %v2093_v60 = vld [vmem:[#allocation4 + $0x68] sm:$0xff] }
 0x5f4   :  { %v2094_v2 = vld [vmem:[#allocation4 + $0x70] sm:$0xff] }
 0x5f5   :  { %2684 = vpow2.f32 %v2517_v62  ;;  %v2092_v62 = vld [vmem:[#allocation4 + $0x60] sm:$0xff] }
 0x5f6   :  { %2686 = vtanh.f32 %v1802_v5  ;;  %v2091_v5 = vld [vmem:[#allocation4 + $0x58] sm:$0xff] }
 0x5f7   :  { %2688 = vpow2.f32 %v2518_v15  ;;  %v2085_v15 = vld [vmem:[#allocation4 + $0x28] sm:$0xff] }
 0x600   :  { %v2683_v6 = vpop.eup %2682 }
 0x601   :  { %v1807_v41 = vadd.f32 1.0, %v2683_v6  ;;  %v2090_v6 = vld [vmem:[#allocation4 + $0x50] sm:$0xff] }
 0x602   :  { %v2685_v43 = vpop.eup %2684 }
 0x603   :  { %2690 = vrcp.f32 %v1807_v41  ;;  %v1813_v45 = vadd.f32 1.0, %v2685_v43  ;;  %v2687_v39 = vpop.eup %2686  ;;  %v2084_v41 = vld [vmem:[#allocation4 + $0x20] sm:$0xff]  ;;  %v2087_v43 = vld [vmem:[#allocation4 + $0x38] sm:$0xff] }
 0x604   :  { %v2689_v33 = vpop.eup %2688 }
 0x605   :  { %2692 = vrcp.f32 %v1813_v45  ;;  %v1820_v49 = vadd.f32 1.0, %v2689_v33  ;;  %v2081_v45 = vld [vmem:[#allocation4 + $0x8] sm:$0xff]  ;;  %v2080_v33 = vld [vmem:[#allocation4] sm:$0xff] }
 0x607   :  { %2694 = vrcp.f32 %v1820_v49 }
 0x610   :  { %v2691_v28 = vpop.eup %2690 }
 0x611   :  { %v1824_v44 = vmul.f32 %v2691_v28, %v2687_v39  ;;  %v2086_v39 = vld [vmem:[#allocation4 + $0x30] sm:$0xff]  ;;  %v2083_v28 = vld [vmem:[#allocation4 + $0x18] sm:$0xff] }
 0x612   :  { %v2693_v47 = vpop.eup %2692 }
 0x613   :  { %v1823_v29 = vmul.f32 %v2693_v47, %v3768_v59  ;;  %v2121_v59 = vld [vmem:[#allocation4 + $0x148] sm:$0xff]  ;;  %v2339_v47 = vld [vmem:[#allocation7 + $0x78] sm:$0xff] }
 0x614   :  { %v2695_v34 = vpop.eup %2694 }
 0x615   :  { %v3845_v26 = vadd.f32 %v1824_v44, %v1823_v29  ;;  %v2082_v44 = vld [vmem:[#allocation4 + $0x10] sm:$0xff]  ;;  %v4139_v29 = vld [vmem:[#allocation58_spill] sm:$0xff] }
 0x617   :  { %2696 = vtanh.f32 %v3845_v26 }
 0x624   :  { %v2697_v0 = vpop.eup %2696 }
 0x625   :  { %v3848_v31 = vmul.f32 %v2697_v0, %v2695_v34 }
 0x627   :  { %1966 = vmatmul.mubr.f32.vlgmr.msra.gmra.mxu0 %v3848_v31  ;;  %2037 = vmatmul.mubr.f32.vlgmr.msra.gmra.mxu1 %v3848_v31 }
 0x628   :  { %2216 = vmatpush1.msra.mxu1 %v3639_v4  ;;  %2208 = vmatprep.mubr.f32.mxu0 %v4132_v24  ;;  %v2137_v4 = vld [vmem:[#allocation4 + $0x1c8] sm:$0xff] }
 0x629   :  { %2217 = vmatprep.subr.mxu1 %v3642_v10  ;;  %2279 = vmatprep.mubr.f32.mxu1 %v4132_v24  ;;  %v2133_v10 = vld [vmem:[#allocation4 + $0x1a8] sm:$0xff]  ;;  %v2107_v24 = vld [vmem:[#allocation4 + $0xd8] sm:$0xff] }
 0x62a   :  { %2218 = vmatpush1.msra.mxu1 %v3645_v19  ;;  %2145 = vmatpush1.msra.mxu0 %v2140_v46  ;;  %v2129_v19 = vld [vmem:[#allocation4 + $0x188] sm:$0xff]  ;;  %v4140_v46 = vld [vmem:[#allocation59_spill] sm:$0xff] }
 0x62b   :  { %2219 = vmatprep.subr.mxu1 %v3648_v22  ;;  %2146 = vmatprep.subr.mxu0 %v2137_v4  ;;  %v2128_v22 = vld [vmem:[#allocation4 + $0x180] sm:$0xff] }
 0x62c   :  { %2220 = vmatpush1.msra.mxu1 %v3651_v40  ;;  %2147 = vmatpush1.msra.mxu0 %v2136_v48  ;;  %v2125_v40 = vld [vmem:[#allocation4 + $0x168] sm:$0xff] }
 0x62d   :  { %2221 = vmatprep.subr.mxu1 %v3654_v8  ;;  %2148 = vmatprep.subr.mxu0 %v2133_v10  ;;  %v2124_v8 = vld [vmem:[#allocation4 + $0x160] sm:$0xff] }
 0x62e   :  { %2222 = vmatpush1.msra.mxu1 %v3657_v21  ;;  %2149 = vmatpush1.msra.mxu0 %v2132_v38  ;;  %v2127_v21 = vld [vmem:[#allocation4 + $0x178] sm:$0xff] }
 0x62f   :  { %2150 = vmatprep.subr.mxu0 %v2129_v19  ;;  %2223 = vmatprep.subr.mxu1 %v2127_v21  ;;  %v4141_v19 = vld [vmem:[#allocation45_spill] sm:$0xff] }
 0x630   :  { %2151 = vmatpush1.msra.mxu0 %v2128_v22  ;;  %2224 = vmatpush1.msra.mxu1 %v2126_v32 }
 0x631   :  { %2152 = vmatprep.subr.mxu0 %v2125_v40  ;;  %2225 = vmatprep.subr.mxu1 %v2123_v50  ;;  %v4142_v40 = vld [vmem:[#allocation44_spill] sm:$0xff] }
 0x632   :  { %2153 = vmatpush1.msra.mxu0 %v2124_v8  ;;  %2226 = vmatpush1.msra.mxu1 %v2122_v52 }
 0x633   :  { %2154 = vmatprep.subr.mxu0 %v2121_v59  ;;  %2227 = vmatprep.subr.mxu1 %v2119_v54 }
 0x634   :  { %2155 = vmatpush1.msra.mxu0 %v2120_v42  ;;  %2228 = vmatpush1.msra.mxu1 %v2118_v56 }
 0x635   :  { %2156 = vmatprep.subr.mxu0 %v2117_v51  ;;  %2229 = vmatprep.subr.mxu1 %v2115_v12 }
 0x636   :  { %2157 = vmatpush1.msra.mxu0 %v2116_v53  ;;  %2230 = vmatpush1.msra.mxu1 %v2114_v14 }
 0x637   :  { %2158 = vmatprep.subr.mxu0 %v2113_v55  ;;  %2231 = vmatprep.subr.mxu1 %v2111_v17  ;;  %v2338_v17 = vld [vmem:[#allocation7 + $0x70] sm:$0xff] }
 0x638   :  { %2159 = vmatpush1.msra.mxu0 %v2112_v11  ;;  %2232 = vmatpush1.msra.mxu1 %v2110_v20  ;;  %v2337_v20 = vld [vmem:[#allocation7 + $0x68] sm:$0xff] }
 0x639   :  { %2160 = vmatprep.subr.mxu0 %v2109_v13  ;;  %2233 = vmatprep.subr.mxu1 %v2107_v24  ;;  %v2334_v24 = vld [vmem:[#allocation7 + $0x50] sm:$0xff] }
 0x63a   :  { %2161 = vmatpush1.msra.mxu0 %v2108_v16  ;;  %2234 = vmatpush1.msra.mxu1 %v2106_v27  ;;  %v2332_v27 = vld [vmem:[#allocation7 + $0x40] sm:$0xff] }
 0x63b   :  { %2162 = vmatprep.subr.mxu0 %v2105_v18  ;;  %2235 = vmatprep.subr.mxu1 %v2103_v35  ;;  %v4143_v18 = vld [vmem:[#allocation61_spill] sm:$0xff]  ;;  %v2330_v35 = vld [vmem:[#allocation7 + $0x30] sm:$0xff] }
 0x63c   :  { %2163 = vmatpush1.msra.mxu0 %v2104_v23  ;;  %2236 = vmatpush1.msra.mxu1 %v2102_v37  ;;  %v2336_v23 = vld [vmem:[#allocation7 + $0x60] sm:$0xff] }
 0x63d   :  { %2164 = vmatprep.subr.mxu0 %v2101_v25  ;;  %2237 = vmatprep.subr.mxu1 %v2099_v58  ;;  %v2333_v25 = vld [vmem:[#allocation7 + $0x48] sm:$0xff]  ;;  %v2328_v37 = vld [vmem:[#allocation7 + $0x20] sm:$0xff]  ;;  %v2326_v58 = vld [vmem:[#allocation7 + $0x10] sm:$0xff] }
 0x63e   :  { %2165 = vmatpush1.msra.mxu0 %v2100_v30  ;;  %2238 = vmatpush1.msra.mxu1 %v2098_v61  ;;  %v2331_v30 = vld [vmem:[#allocation7 + $0x38] sm:$0xff]  ;;  %v2324_v61 = vld [vmem:[#allocation7] sm:$0xff] }
 0x63f   :  { %2166 = vmatprep.subr.mxu0 %v2097_v36  ;;  %2239 = vmatprep.subr.mxu1 %v2095_v63  ;;  %v2329_v36 = vld [vmem:[#allocation7 + $0x28] sm:$0xff]  ;;  %v4145_v63 = vld [vmem:[#allocation35_spill] sm:$0xff] }
 0x640   :  { %2167 = vmatpush1.msra.mxu0 %v2096_v57  ;;  %2240 = vmatpush1.msra.mxu1 %v2094_v2  ;;  %v2327_v57 = vld [vmem:[#allocation7 + $0x18] sm:$0xff] }
 0x641   :  { %2168 = vmatprep.subr.mxu0 %v2093_v60  ;;  %2241 = vmatprep.subr.mxu1 %v2091_v5  ;;  %v2325_v60 = vld [vmem:[#allocation7 + $0x8] sm:$0xff]  ;;  %v4148_v5 = vld [vmem:[#allocation13_spill] sm:$0xff] }
 0x642   :  { %2169 = vmatpush1.msra.mxu0 %v2092_v62  ;;  %2242 = vmatpush1.msra.mxu1 %v2090_v6  ;;  %v4144_v62 = vld [vmem:[#allocation14_spill] sm:$0xff]  ;;  %v4149_v6 = vld [vmem:[#allocation60_spill] sm:$0xff] }
 0x643   :  { %2170 = vmatprep.subr.mxu0 %v2089_v1  ;;  %2243 = vmatprep.subr.mxu1 %v2087_v43  ;;  %v4146_v1 = vld [vmem:[#allocation51_spill] sm:$0xff] }
 0x644   :  { %2171 = vmatpush1.msra.mxu0 %v2088_v3  ;;  %2244 = vmatpush1.msra.mxu1 %v2086_v39  ;;  %v4147_v3 = vld [vmem:[#allocation47_spill] sm:$0xff] }
 0x645   :  { %2172 = vmatprep.subr.mxu0 %v2085_v15  ;;  %2245 = vmatprep.subr.mxu1 %v2083_v28  ;;  %v226_v15 = vadd.f32 %v4148_v5, %v4147_v3 }
 0x646   :  { %2173 = vmatpush1.msra.mxu0 %v2084_v41  ;;  %2246 = vmatpush1.msra.mxu1 %v2082_v44 }
 0x647   :  { %2174 = vmatprep.subr.mxu0 %v2081_v45 }
 0x648   :  { %2175 = vmatpush1.msra.mxu0 %v2080_v33 }
 0x649   :  { %2550 = vmatprep.subr.mxu0 %v2339_v47 }
 0x6e7   :  { %v1967_v49 = vpop.f32.mrf.mxu0  ;;  %v2038_v48 = vpop.f32.mrf.mxu1 }
 0x6e8   :  { %v2043_v34 = vadd.f32 %v1967_v49, %v4139_v29  ;;  %v2045_v8 = vadd.f32 %v2038_v48, %v4142_v40 }
 0x6e9   :  { %v1969_v0 = vpop.f32.mrf.mxu0  ;;  %v2040_v38 = vpop.f32.mrf.mxu1 }
 0x6ea   :  { %v2519_v7 = vmul.f32 -1.442695, %v2043_v34  ;;  %v2044_v4 = vadd.f32 %v1969_v0, %v4140_v46  ;;  %v2046_v22 = vadd.f32 %v2040_v38, %v4141_v19 }
 0x6ec   :  { %2698 = vpow2.f32 %v2519_v7  ;;  %v2520_v10 = vmul.f32 -1.442695, %v2044_v4  ;;  %v2521_v21 = vmul.f32 -1.442695, %v2046_v22  ;;  %v2525_v4 = vld [vmem:[%s3895_s5] ss:$0 sm:$0xff] }
 0x6ed   :  { %s2803_s5 = smov [#allocation9]  }
 0x6ee   :  { %2700 = vpow2.f32 %v2520_v10  ;;  %s2465_s18 = sshll.u32 %s2803_s5, 4  ;;  %s2466_s18 = int_to_ptr.vmem [resolvable:$true] %s2465_s18 }
 0x6ef   :  { %2702 = vtanh.f32 %v2045_v8  ;;  %s2770_s19 = scalar_lea.vmem %s2466_s18, 1024  ;;  %p2775_p11 = scmp.lt.s32.totalorder %s2466_s18, %s2466_s18 }
 0x6f0   :  { %2704 = vpow2.f32 %v2521_v21  ;;  %p2771_p10 = scmp.ne.s32.totalorder %s2466_s18, %s2770_s19  ;;  %p2776_p12 = scmp.lt.s32.totalorder %s2770_s19, %s2770_s19 }
 0x6f2   :  { %p2777_p13 = por %p2776_p12, %p2775_p11 }
 0x6f4   :  { %p2778_p0 = pnand %p2777_p13, %p2771_p10 }
 0x6f9   :  { %v2699_v59 = vpop.eup %2698 }
 0x6fa   :  { %v2050_v32 = vadd.f32 1.0, %v2699_v59 }
 0x6fb   :  { %v2701_v42 = vpop.eup %2700 }
 0x6fc   :  { %2706 = vrcp.f32 %v2050_v32  ;;  %v2056_v50 = vadd.f32 1.0, %v2701_v42  ;;  %v2703_v51 = vpop.eup %2702 }
 0x6fd   :  { %v2705_v52 = vpop.eup %2704 }
 0x6fe   :  { %2708 = vrcp.f32 %v2056_v50  ;;  %v2063_v56 = vadd.f32 1.0, %v2705_v52 }
 0x700   :  { %2710 = vrcp.f32 %v2063_v56 }
 0x709   :  { %v2707_v53 = vpop.eup %2706 }
 0x70a   :  { %v2067_v54 = vmul.f32 %v2707_v53, %v2703_v51 }
 0x70b   :  { %v2709_v55 = vpop.eup %2708 }
 0x70c   :  { %v2066_v11 = vmul.f32 %v2709_v55, %v3845_v26  ;;  %v2335_v26 = vld [vmem:[#allocation7 + $0x58] sm:$0xff] }
 0x70d   :  { %v2711_v13 = vpop.eup %2710 }
 0x70e   :  { %v3866_v12 = vadd.f32 %v2067_v54, %v2066_v11 }
 0x710   :  { %2712 = vtanh.f32 %v3866_v12 }
 0x71d   :  { %v2713_v14 = vpop.eup %2712 }
 0x71e   :  { %v2070_v16 = vmul.f32 %v2713_v14, %v2711_v13 }
 0x720   :  { %2209 = vmatmul.mubr.f32.vlgmr.msra.gmra.mxu0 %v2070_v16  ;;  %2280 = vmatmul.mubr.f32.vlgmr.msra.gmra.mxu1 %v2070_v16 }
 0x721   :  { %2551 = vmatpush3.msra.mxu0 %v2339_v47  ;;  %2582 = vmatprep.mubr.f32.mxu0 %v4143_v18  ;;  %v4150_v47 = vld [vmem:[#allocation49_spill] sm:$0xff] }
 0x722   :  { %2552 = vmatprep.subr.mxu0 %v2338_v17 }
 0x723   :  { %2553 = vmatpush3.msra.mxu0 %v2338_v17 }
 0x724   :  { %2554 = vmatprep.subr.mxu0 %v2337_v20 }
 0x725   :  { %2555 = vmatpush3.msra.mxu0 %v2337_v20 }
 0x726   :  { %2556 = vmatprep.subr.mxu0 %v2336_v23 }
 0x727   :  { %2557 = vmatpush3.msra.mxu0 %v2336_v23 }
 0x728   :  { %2558 = vmatprep.subr.mxu0 %v2335_v26 }
 0x729   :  { %2559 = vmatpush3.msra.mxu0 %v2335_v26 }
 0x72a   :  { %2560 = vmatprep.subr.mxu0 %v2334_v24 }
 0x72b   :  { %2561 = vmatpush3.msra.mxu0 %v2334_v24 }
 0x72c   :  { %2562 = vmatprep.subr.mxu0 %v2333_v25 }
 0x72d   :  { %2563 = vmatpush3.msra.mxu0 %v2333_v25 }
 0x72e   :  { %2564 = vmatprep.subr.mxu0 %v2332_v27 }
 0x72f   :  { %2565 = vmatpush3.msra.mxu0 %v2332_v27 }
 0x730   :  { %2566 = vmatprep.subr.mxu0 %v2331_v30 }
 0x731   :  { %2567 = vmatpush3.msra.mxu0 %v2331_v30 }
 0x732   :  { %2568 = vmatprep.subr.mxu0 %v2330_v35 }
 0x733   :  { %2569 = vmatpush3.msra.mxu0 %v2330_v35 }
 0x734   :  { %2570 = vmatprep.subr.mxu0 %v2329_v36 }
 0x735   :  { %2571 = vmatpush3.msra.mxu0 %v2329_v36 }
 0x736   :  { %2572 = vmatprep.subr.mxu0 %v2328_v37 }
 0x737   :  { %2573 = vmatpush3.msra.mxu0 %v2328_v37 }
 0x738   :  { %2574 = vmatprep.subr.mxu0 %v2327_v57 }
 0x739   :  { %2575 = vmatpush3.msra.mxu0 %v2327_v57 }
 0x73a   :  { %2576 = vmatprep.subr.mxu0 %v2326_v58 }
 0x73b   :  { %2577 = vmatpush3.msra.mxu0 %v2326_v58 }
 0x73c   :  { %2578 = vmatprep.subr.mxu0 %v2325_v60 }
 0x73d   :  { %2579 = vmatpush3.msra.mxu0 %v2325_v60 }
 0x73e   :  { %2580 = vmatprep.subr.mxu0 %v2324_v61 }
 0x73f   :  { %2581 = vmatpush3.msra.mxu0 %v2324_v61 }
 0x740   :  { %2583 = vmatmul.mubr.f32.vlgmr.msra.gmra.mxu0 %v4144_v62 }
 0x741   :  { %2585 = vmatprep.mubr.f32.mxu0 %v4145_v63 }
 0x744   :  { %2586 = vmatmul.mubr.f32.gmra.mxu0 %v4146_v1 }
 0x745   :  { %2588 = vmatprep.mubr.f32.mxu0 %v3771_v9  ;;  %v4151_v9 = vld [vmem:[#allocation46_spill] sm:$0xff] }
 0x748   :  { %2589 = vmatmul.mubr.f32.gmra.mxu0 %v3848_v31 }
 0x749   :  { %2591 = vmatprep.mubr.f32.mxu0 %v2070_v16 }
 0x7e0   :  { %v2210_v2 = vpop.f32.mrf.mxu0  ;;  %v2281_v33 = vpop.f32.mrf.mxu1 }
 0x7e1   :  { %v2286_v41 = vadd.f32 %v2210_v2, %v4149_v6  ;;  %v2288_v29 = vadd.f32 %v2281_v33, %v4151_v9 }
 0x7e2   :  { %v2212_v43 = vpop.f32.mrf.mxu0  ;;  %v2283_v44 = vpop.f32.mrf.mxu1 }
 0x7e3   :  { %v2522_v45 = vmul.f32 -1.442695, %v2286_v41  ;;  %v2287_v39 = vadd.f32 %v2212_v43, %v226_v15  ;;  %v2289_v49 = vadd.f32 %v2283_v44, %v4150_v47 }
 0x7e5   :  { %2714 = vpow2.f32 %v2522_v45  ;;  %v2523_v28 = vmul.f32 -1.442695, %v2287_v39  ;;  %v2524_v31 = vmul.f32 -1.442695, %v2289_v49 }
 0x7e7   :  { %2716 = vpow2.f32 %v2523_v28 }
 0x7e8   :  { %2718 = vtanh.f32 %v2288_v29 }
 0x7e9   :  { %2720 = vpow2.f32 %v2524_v31 }
 0x7f2   :  { %v2715_v34 = vpop.eup %2714 }
 0x7f3   :  { %v2293_v0 = vadd.f32 1.0, %v2715_v34 }
 0x7f4   :  { %v2717_v7 = vpop.eup %2716 }
 0x7f5   :  { %2722 = vrcp.f32 %v2293_v0  ;;  %v2299_v46 = vadd.f32 1.0, %v2717_v7  ;;  %v2719_v48 = vpop.eup %2718 }
 0x7f6   :  { %v2721_v38 = vpop.eup %2720 }
 0x7f7   :  { %2724 = vrcp.f32 %v2299_v46  ;;  %v2306_v32 = vadd.f32 1.0, %v2721_v38 }
 0x7f9   :  { %2726 = vrcp.f32 %v2306_v32 }
 0x800   :  { %v2584_v10 = vpop.f32.mrf.mxu0 }
 0x801   :  { %v2419_v19 = vadd.f32 %v2584_v10, %v2525_v4 }
 0x802   :  { %v2723_v22 = vpop.eup %2722  ;;  %v2413_v40 = vpop.f32.mrf.mxu0 }
 0x803   :  { %v2310_v8 = vmul.f32 %v2723_v22, %v2719_v48  ;;  %2453 = vst [vmem:[#allocation9 + $0x8] sm:$0xff] %v2419_v19  ;;  %v2414_v21 = vadd.f32 %v2525_v4, %v2413_v40 }
 0x804   :  { %v2725_v59 = vpop.eup %2724  ;;  %v2587_v42 = vpop.f32.mrf.mxu0 }
 0x805   :  { %v2309_v50 = vmul.f32 %v2725_v59, %v3866_v12  ;;  %2452 = vst [vmem:[#allocation9] sm:$0xff] %v2414_v21  ;;  %v2429_v51 = vadd.f32 %v2587_v42, %v2525_v4 }
 0x806   :  { %v2423_v52 = vpop.f32.mrf.mxu0  ;;  %v2727_v14 = vpop.eup %2726 }
 0x807   :  { %2455 = vst [vmem:[#allocation9 + $0x18] sm:$0xff] %v2429_v51  ;;  %v2424_v53 = vadd.f32 %v2525_v4, %v2423_v52  ;;  %v2311_v54 = vadd.f32 %v2310_v8, %v2309_v50 }
 0x808   :  { %v2590_v55 = vpop.f32.mrf.mxu0 }
 0x809   :  { %2454 = vst [vmem:[#allocation9 + $0x10] sm:$0xff] %v2424_v53  ;;  %v2439_v56 = vadd.f32 %v2590_v55, %v2525_v4  ;;  %2728 = vtanh.f32 %v2311_v54 }
 0x80a   :  { %v2433_v11 = vpop.f32.mrf.mxu0 }
 0x80b   :  { %2457 = vst [vmem:[#allocation9 + $0x28] sm:$0xff] %v2439_v56  ;;  %v2434_v13 = vadd.f32 %v2525_v4, %v2433_v11 }
 0x80d   :  { %2456 = vst [vmem:[#allocation9 + $0x20] sm:$0xff] %v2434_v13 }
 0x816   :  { %v2729_v16 = vpop.eup %2728 }
 0x817   :  { %v2313_v17 = vmul.f32 %v2729_v16, %v2727_v14 }
 0x819   :  { %2592 = vmatmul.mubr.f32.gmra.mxu0 %v2313_v17 }
 0x8d9   :  { %v2593_v12 = vpop.f32.mrf.mxu0 }
 0x8da   :  { %v2449_v18 = vadd.f32 %v2593_v12, %v2525_v4 }
 0x8db   :  { %v2443_v20 = vpop.f32.mrf.mxu0 }
 0x8dc   :  { %2459 = vst [vmem:[#allocation9 + $0x38] sm:$0xff] %v2449_v18  ;;  %v2444_v23 = vadd.f32 %v2525_v4, %v2443_v20 }
 0x8de   :  { %2458 = vst [vmem:[#allocation9 + $0x30] sm:$0xff] %v2444_v23 }
 0x8df   :  { %2781 = shalt.err (!%p2778_p0)
}
 0x8e0   :  { %2471 = dma.vmem_to_hbm [thread:$0]  %s2466_s18, 1024, %s3896_s6, [#allocation6], %s2800_s7, %s2800_s7, %s2801_s8  }
 0x8e1   :  { %2794 = dma.done.wait [#allocation6], 1024  }
 0x8e2   :  { %2795 = vsyncadd [#allocation6], 4294966272 }
 0x8e3   :  { %2475 = vsyncpa [#allocation5], 1 }
 0x8e4   :  { %2476 = vsyncpa [#allocation8], 1 }
 0x8e5   :  { %2477 = vsyncpa [#allocation6], 1 }

</bundles_post_ra>
